<compile_context>
chip_gen: v6e
topology: v6e:2x2x1
jax: 0.10.0
libtpu: 0.0.40
codegen_flags: <defaults>
</compile_context>

<pallas_src>
import jax
import jax.numpy as jnp
from jax.experimental import pallas as pl
from jax.experimental.pallas import tpu as pltpu

LANE = 128                # vreg lane width (last dim)
BLOCK_ROWS = 2048         # rows per grid step in the tiled fallback (1 MiB f32 / input)
NUM_CORE_SLOTS = 2        # leading "parallel" grid axis (2 TCs on v7x; harmless on 1-TC chips)


def _vmem_capacity_bytes():
    try:
        cap = int(pltpu.get_tpu_info().vmem_capacity_bytes)
        if cap > 0:
            return cap
    except Exception:
        pass
    return 64 * 1024 * 1024          # conservative default (v7x per-core VMEM)


_VMEM_CAP = _vmem_capacity_bytes()
# Single-buffered (no-grid) fused call: keep raw inputs to ~1/4 of VMEM so the
# in-kernel f32 upcast temporaries always fit.  Generation-aware (64 vs 128 MiB).
_FUSE_VMEM_BUDGET = _VMEM_CAP // 4
_VMEM_LIMIT = min(_VMEM_CAP - (8 << 20), 100 << 20)


# ---------------------------------------------------------------------------
# Layout helpers
# ---------------------------------------------------------------------------
def _as2d(x):
    """Collapse leading dims to 2D — a free (bitcast-compatible) reshape for
    contiguous arrays; no padding, no dtype cast (upcast happens in-kernel)."""
    if x.ndim == 0:
        return x.reshape(1, 1)
    if x.ndim == 1:
        return x.reshape(1, x.shape[0])
    if x.ndim == 2:
        return x
    return x.reshape(-1, x.shape[-1])


def _padded_f32_bytes(x2d):
    """Estimated VMEM footprint of one whole-array block with (8,128) padding."""
    r, c = x2d.shape
    return ((r + 7) // 8 * 8) * ((c + 127) // 128 * 128) * 4


def _rows2d(x):
    """Flatten to (rows, 128) in the ORIGINAL dtype for the tiled path.
    Aligned sizes are a free collapsing reshape; only ragged sizes pay one pad copy."""
    # TODO(synk): mask the ragged tail in-kernel instead of jnp.pad to avoid a
    # full-tensor HBM copy when a very large input has a non-1024-aligned size.
    flat = jnp.ravel(x)
    n = flat.shape[0]
    pad = (-n) % (8 * LANE)
    if pad:
        flat = jnp.pad(flat, (0, pad))
    return flat.reshape(-1, LANE)


def _pad_rows_to(arr, multiple):
    pad = (-arr.shape[0]) % multiple
    if pad:
        arr = jnp.pad(arr, ((0, pad), (0, 0)))
    return arr


def _pow2_floor(n, lo=8):
    p = lo
    while p * 2 <= n:
        p *= 2
    return p


# ---------------------------------------------------------------------------
# Fused kernel: all (small) loss terms in one pallas_call, whole arrays in VMEM.
# Outputs raw sums: [sum|a_k - b_k| per L1 pair] + [sum(d_k) per hinge tensor].
# ---------------------------------------------------------------------------
def _make_fused_kernel(n_l1, n_sum):
    def kernel(*refs):
        out_ref = refs[-1]                          # (n_l1 + n_sum,) f32 in SMEM
        for k in range(n_l1):
            a = refs[2 * k][...].astype(jnp.float32)
            b = refs[2 * k + 1][...].astype(jnp.float32)
            out_ref[k] = jnp.sum(jnp.abs(a - b))
        base = 2 * n_l1
        for k in range(n_sum):
            out_ref[n_l1 + k] = jnp.sum(refs[base + k][...].astype(jnp.float32))
    return kernel


def _fused_sums(arrs, n_l1, n_sum):
    # No grid => whole arrays are DMA'd into VMEM exactly once, with no
    # pipelining and therefore no useless double-buffering for a 1-step call.
    # TODO(synk): if this path is ever used for multi-MiB inputs, give it a
    # small grid over a shared leading row axis so DMA overlaps the VPU work.
    n_out = n_l1 + n_sum
    return pl.pallas_call(
        _make_fused_kernel(n_l1, n_sum),
        out_specs=pl.BlockSpec(memory_space=pltpu.SMEM),
        out_shape=jax.ShapeDtypeStruct((n_out,), jnp.float32),
        compiler_params=pltpu.CompilerParams(vmem_limit_bytes=_VMEM_LIMIT),
    )(*arrs)


# ---------------------------------------------------------------------------
# Tiled fallback for tensors too large to keep fully resident in VMEM.
# Per-core (1, 8, 128) accumulator held in the revisited output block; rows of
# each block are folded by pairwise halving (sublane-aligned slices + VPU adds).
# ---------------------------------------------------------------------------
def _fold_rows(x):
    """(R, L) -> (8, L) partial sums, R a power-of-two multiple of 8.
    Same total adds as a linear fold, better summation order, no XLU use."""
    r = x
    while r.shape[0] > 8:
        h = r.shape[0] // 2            # always a multiple of 8
        r = r[:h] + r[h:]
    return r


def _l1_partial_kernel(a_ref, b_ref, out_ref):
    @pl.when(pl.program_id(1) == 0)
    def _():
        out_ref[...] = jnp.zeros_like(out_ref)
    d = jnp.abs(a_ref[...].astype(jnp.float32) - b_ref[...].astype(jnp.float32))
    out_ref[...] += _fold_rows(d)[None]


def _sum_partial_kernel(x_ref, out_ref):
    @pl.when(pl.program_id(1) == 0)
    def _():
        out_ref[...] = jnp.zeros_like(out_ref)
    out_ref[...] += _fold_rows(x_ref[...].astype(jnp.float32))[None]


def _tiled_reduce(kernel, tiles, block_rows=BLOCK_ROWS):
    rows = tiles[0].shape[0]
    br = _pow2_floor(min(block_rows, rows))              # power-of-two rows/block
    tiles = [_pad_rows_to(t, NUM_CORE_SLOTS * br) for t in tiles]
    rows = tiles[0].shape[0]
    steps = rows // (NUM_CORE_SLOTS * br)
    partial = pl.pallas_call(
        kernel,
        grid=(NUM_CORE_SLOTS, steps),
        in_specs=[pl.BlockSpec((br, LANE), lambda c, i, s=steps: (c * s + i, 0))
                  for _ in tiles],
        out_specs=pl.BlockSpec((1, 8, LANE), lambda c, i: (c, 0, 0)),
        out_shape=jax.ShapeDtypeStruct((NUM_CORE_SLOTS, 8, LANE), jnp.float32),
        compiler_params=pltpu.CompilerParams(
            dimension_semantics=("parallel", "arbitrary"),
            vmem_limit_bytes=_VMEM_LIMIT),
    )(*tiles)
    return jnp.sum(partial)        # tiny (2,8,128) cross-core reduce in XLA


def _l1_sum_tiled(at, bt):
    return _tiled_reduce(_l1_partial_kernel, [at, bt])


def _sum_tiled(xt):
    return _tiled_reduce(_sum_partial_kernel, [xt])


# ---------------------------------------------------------------------------
# Hybrid dispatch: one fused launch for everything that fits in VMEM;
# only oversized terms fall back to the tiled kernel.
# ---------------------------------------------------------------------------
def _loss_sums(l1_pairs, sum_tensors):
    """Raw sums: [sum|a-b| per L1 pair] + [sum(d) per tensor], in order."""
    l1_pairs = list(l1_pairs)
    sum_tensors = list(sum_tensors)
    n_l1, n_sum = len(l1_pairs), len(sum_tensors)
    n_terms = n_l1 + n_sum

    term_arrays = ([[_as2d(a), _as2d(b)] for a, b in l1_pairs]
                   + [[_as2d(d)] for d in sum_tensors])
    term_bytes = [sum(_padded_f32_bytes(t) for t in arrs) for arrs in term_arrays]

    fused_set, used = set(), 0
    for i in sorted(range(n_terms), key=lambda j: term_bytes[j]):   # smallest first
        if used + term_bytes[i] <= _FUSE_VMEM_BUDGET:
            fused_set.add(i)
            used += term_bytes[i]

    results = [None] * n_terms
    f_l1 = [i for i in range(n_l1) if i in fused_set]
    f_sum = [i for i in range(n_l1, n_terms) if i in fused_set]
    if f_l1 or f_sum:
        arrs = []
        for i in f_l1:
            arrs.extend(term_arrays[i])
        for i in f_sum:
            arrs.extend(term_arrays[i])
        fused = _fused_sums(arrs, len(f_l1), len(f_sum))
        for j, i in enumerate(f_l1):
            results[i] = fused[j]
        for j, i in enumerate(f_sum):
            results[i] = fused[len(f_l1) + j]

    for i in range(n_terms):                 # oversized terms -> tiled kernels
        if results[i] is None:
            if i < n_l1:
                a, b = l1_pairs[i]
                results[i] = _l1_sum_tiled(_rows2d(a), _rows2d(b))
            else:
                results[i] = _sum_tiled(_rows2d(sum_tensors[i - n_l1]))
    return results


@jax.jit
def _neg_mean(x):
    s = _loss_sums([], (x,))[0]
    return -(s / x.size)


# ---------------------------------------------------------------------------
# GLoss module (faithful port of the PyTorch forward semantics)
# ---------------------------------------------------------------------------
class GLoss:
    def __init__(self, lambda_pixel: float, lambda_gan: float) -> None:
        self.lambda1 = float(lambda_pixel)
        self.lambda2 = float(lambda_gan)
        self.lambda3 = float(lambda_gan) * 0.2
        self.weights = [1.0 / 16, 1.0 / 8, 1.0 / 4, 1.0]

        weights = tuple(self.weights)
        lam2, lam3 = self.lambda2, self.lambda3

        def fwd_with_dis(xs, xt, sfeats, tfeats, ds, dr, lam1):
            pairs = [(xs, xt)] + list(zip(sfeats, tfeats))
            sums = _loss_sums(pairs, (ds, dr))
            pixel = sums[0] / xs.size
            feat = jnp.float32(0.0)
            for i in range(len(sfeats)):
                feat = feat + weights[i] * (sums[1 + i] / sfeats[i].size)
            hs = -(sums[1 + len(sfeats)] / ds.size)
            hr = -(sums[2 + len(sfeats)] / dr.size)
            total = feat + lam1 * pixel + lam2 * hs + lam3 * hr
            return total, pixel, feat, hs, hr

        def fwd_no_dis(xs, xt, sfeats, tfeats, lam1):
            pairs = [(xs, xt)] + list(zip(sfeats, tfeats))
            sums = _loss_sums(pairs, ())
            pixel = sums[0] / xs.size
            feat = jnp.float32(0.0)
            for i in range(len(sfeats)):
                feat = feat + weights[i] * (sums[1 + i] / sfeats[i].size)
            total = feat + lam1 * pixel
            return total, pixel, feat

        self._fwd_with_dis = jax.jit(fwd_with_dis)
        self._fwd_no_dis = jax.jit(fwd_no_dis)

    def hinge(self, dloss):
        """Generator hinge loss: -mean(dloss)."""
        return _neg_mean(dloss)

    def __call__(self, xs, xt, sfeatures, tfeatures,
                 dis_student=None, dis_random=None):
        log = {}
        sfeats = tuple(sfeatures)
        tfeats = tuple(tfeatures)
        lam1 = jnp.float32(self.lambda1)   # traced -> no recompile as it decays

        if dis_student is not None and dis_random is not None:
            total, pixel, feat, hs, hr = self._fwd_with_dis(
                xs, xt, sfeats, tfeats, dis_student, dis_random, lam1)
            # Device scalars (no .item()/float() host sync in the hot path).
            log['G/Pixel Loss'] = pixel
            log['G/Feature Loss'] = feat
            log['G/Adversarial Distillation Loss'] = hs
            log['G/Adversarial GAN Loss'] = hr
            log['G/Total Loss'] = total
        else:
            total, pixel, feat = self._fwd_no_dis(xs, xt, sfeats, tfeats, lam1)
            log['G/Pixel Loss'] = pixel
            log['G/Feature Loss'] = feat
            log['G/Total Loss'] = total

        # mimic the PyTorch module's lambda1 decay side effect
        self.lambda1 = max(0.0, self.lambda1 - 0.01)
        return total, log


# ---------------------------------------------------------------------------
# Pure-JAX reference for verification
# ---------------------------------------------------------------------------
def _ref_gloss(xs, xt, sfeat, tfeat, ds, dr, lam1, lam2, lam3, weights):
    pixel = jnp.mean(jnp.abs(xs - xt))
    feat = sum(w * jnp.mean(jnp.abs(s - t))
               for w, s, t in zip(weights, sfeat, tfeat))
    hs = -jnp.mean(ds)
    hr = -jnp.mean(dr)
    return feat + lam1 * pixel + lam2 * hs + lam3 * hr


if __name__ == "__main__":
    key = jax.random.PRNGKey(0)
    ks = jax.random.split(key, 14)

    # generator outputs (NCHW, small shapes)
    xs = jax.random.normal(ks[0], (2, 4, 16, 16), jnp.float32)
    xt = jax.random.normal(ks[1], (2, 4, 16, 16), jnp.float32)

    # discriminator intermediate features (4 levels, weights 1/16, 1/8, 1/4, 1)
    feat_shapes = [(2, 8, 16, 16), (2, 16, 8, 8), (2, 32, 4, 4), (2, 64, 2, 2)]
    sfeatures = [jax.random.normal(ks[2 + i], s, jnp.float32)
                 for i, s in enumerate(feat_shapes)]
    tfeatures = [jax.random.normal(ks[6 + i], s, jnp.float32)
                 for i, s in enumerate(feat_shapes)]

    # discriminator logits
    dis_student = jax.random.normal(ks[10], (2, 1, 4, 4), jnp.float32)
    dis_random = jax.random.normal(ks[11], (2, 1, 4, 4), jnp.float32)

    loss_mod = GLoss(lambda_pixel=1.0, lambda_gan=0.5)
    total, log = loss_mod(xs, xt, sfeatures, tfeatures,
                          dis_student, dis_random)
    total = jax.block_until_ready(total)

    ref = _ref_gloss(xs, xt, sfeatures, tfeatures, dis_student, dis_random,
                     1.0, 0.5, 0.5 * 0.2, loss_mod.weights)
    assert jnp.allclose(total, ref, rtol=1e-5, atol=1e-5), (total, ref)

    # jitted standalone hinge path (fused single-tensor sum kernel)
    h = jax.block_until_ready(loss_mod.hinge(dis_student))
    assert jnp.allclose(h, -jnp.mean(dis_student), rtol=1e-5, atol=1e-5), h

    # Exercise the tiled fallback path (2-slot parallel grid, single-vreg
    # accumulator in the output block) on a moderately sized tensor.
    big_a = jax.random.normal(ks[12], (4096, 128), jnp.float32)
    big_b = jax.random.normal(ks[13], (4096, 128), jnp.float32)
    t_l1 = _tiled_reduce(_l1_partial_kernel,
                         [_rows2d(big_a), _rows2d(big_b)], block_rows=1024)
    t_l1 = jax.block_until_ready(t_l1)
    assert jnp.allclose(t_l1, jnp.sum(jnp.abs(big_a - big_b)),
                        rtol=2e-3, atol=1.0), t_l1
    t_s = _tiled_reduce(_sum_partial_kernel, [_rows2d(big_a)], block_rows=1024)
    t_s = jax.block_until_ready(t_s)
    assert jnp.allclose(t_s, jnp.sum(big_a), rtol=2e-3, atol=1.0), t_s

    print("KERNEL_OK")
</pallas_src>

<mosaic_0001>
module attributes {stable_mosaic.version = 11 : i64} {
  func.func @kernel(%arg0: memref<128x16xf32, #tpu.memory_space<vmem>>, %arg1: memref<128x16xf32, #tpu.memory_space<vmem>>, %arg2: memref<256x16xf32, #tpu.memory_space<vmem>>, %arg3: memref<256x16xf32, #tpu.memory_space<vmem>>, %arg4: memref<256x8xf32, #tpu.memory_space<vmem>>, %arg5: memref<256x8xf32, #tpu.memory_space<vmem>>, %arg6: memref<256x4xf32, #tpu.memory_space<vmem>>, %arg7: memref<256x4xf32, #tpu.memory_space<vmem>>, %arg8: memref<256x2xf32, #tpu.memory_space<vmem>>, %arg9: memref<256x2xf32, #tpu.memory_space<vmem>>, %arg10: memref<8x4xf32, #tpu.memory_space<vmem>>, %arg11: memref<8x4xf32, #tpu.memory_space<vmem>>, %arg12: memref<7xf32, #tpu.memory_space<smem>>) attributes {dimension_semantics = [], scalar_prefetch = 0 : i64, scratch_operands = 0 : i64, tpu.core_type = #tpu.core_type<tc>} {
    %c0 = arith.constant 0 : index
    %c0_0 = arith.constant 0 : index
    %0 = vector.load %arg0[%c0, %c0_0] : memref<128x16xf32, #tpu.memory_space<vmem>>, vector<128x16xf32>
    %c0_1 = arith.constant 0 : index
    %c0_2 = arith.constant 0 : index
    %1 = vector.load %arg1[%c0_1, %c0_2] : memref<128x16xf32, #tpu.memory_space<vmem>>, vector<128x16xf32>
    %2 = arith.subf %0, %1 : vector<128x16xf32>
    %3 = math.absf %2 : vector<128x16xf32>
    %4 = vector.shape_cast %3 : vector<128x16xf32> to vector<1x128x16xf32>
    %cst = arith.constant dense<0.000000e+00> : vector<1xf32>
    %5 = vector.multi_reduction <add>, %4, %cst [1, 2] : vector<1x128x16xf32> to vector<1xf32>
    %6 = vector.shape_cast %5 : vector<1xf32> to vector<1x1x1xf32>
    %7 = vector.extract %6[0, 0, 0] : f32 from vector<1x1x1xf32>
    %c0_3 = arith.constant 0 : index
    %8 = memref.load %arg12[%c0_3] : memref<7xf32, #tpu.memory_space<smem>>
    memref.store %7, %arg12[%c0_3] : memref<7xf32, #tpu.memory_space<smem>>
    %c0_4 = arith.constant 0 : index
    %c0_5 = arith.constant 0 : index
    %9 = vector.load %arg2[%c0_4, %c0_5] : memref<256x16xf32, #tpu.memory_space<vmem>>, vector<256x16xf32>
    %c0_6 = arith.constant 0 : index
    %c0_7 = arith.constant 0 : index
    %10 = vector.load %arg3[%c0_6, %c0_7] : memref<256x16xf32, #tpu.memory_space<vmem>>, vector<256x16xf32>
    %11 = arith.subf %9, %10 : vector<256x16xf32>
    %12 = math.absf %11 : vector<256x16xf32>
    %13 = vector.shape_cast %12 : vector<256x16xf32> to vector<1x256x16xf32>
    %cst_8 = arith.constant dense<0.000000e+00> : vector<1xf32>
    %14 = vector.multi_reduction <add>, %13, %cst_8 [1, 2] : vector<1x256x16xf32> to vector<1xf32>
    %15 = vector.shape_cast %14 : vector<1xf32> to vector<1x1x1xf32>
    %16 = vector.extract %15[0, 0, 0] : f32 from vector<1x1x1xf32>
    %c1 = arith.constant 1 : index
    %17 = memref.load %arg12[%c1] : memref<7xf32, #tpu.memory_space<smem>>
    memref.store %16, %arg12[%c1] : memref<7xf32, #tpu.memory_space<smem>>
    %c0_9 = arith.constant 0 : index
    %c0_10 = arith.constant 0 : index
    %18 = vector.load %arg4[%c0_9, %c0_10] : memref<256x8xf32, #tpu.memory_space<vmem>>, vector<256x8xf32>
    %c0_11 = arith.constant 0 : index
    %c0_12 = arith.constant 0 : index
    %19 = vector.load %arg5[%c0_11, %c0_12] : memref<256x8xf32, #tpu.memory_space<vmem>>, vector<256x8xf32>
    %20 = arith.subf %18, %19 : vector<256x8xf32>
    %21 = math.absf %20 : vector<256x8xf32>
    %22 = vector.shape_cast %21 : vector<256x8xf32> to vector<1x256x8xf32>
    %cst_13 = arith.constant dense<0.000000e+00> : vector<1xf32>
    %23 = vector.multi_reduction <add>, %22, %cst_13 [1, 2] : vector<1x256x8xf32> to vector<1xf32>
    %24 = vector.shape_cast %23 : vector<1xf32> to vector<1x1x1xf32>
    %25 = vector.extract %24[0, 0, 0] : f32 from vector<1x1x1xf32>
    %c2 = arith.constant 2 : index
    %26 = memref.load %arg12[%c2] : memref<7xf32, #tpu.memory_space<smem>>
    memref.store %25, %arg12[%c2] : memref<7xf32, #tpu.memory_space<smem>>
    %c0_14 = arith.constant 0 : index
    %c0_15 = arith.constant 0 : index
    %27 = vector.load %arg6[%c0_14, %c0_15] : memref<256x4xf32, #tpu.memory_space<vmem>>, vector<256x4xf32>
    %c0_16 = arith.constant 0 : index
    %c0_17 = arith.constant 0 : index
    %28 = vector.load %arg7[%c0_16, %c0_17] : memref<256x4xf32, #tpu.memory_space<vmem>>, vector<256x4xf32>
    %29 = arith.subf %27, %28 : vector<256x4xf32>
    %30 = math.absf %29 : vector<256x4xf32>
    %31 = vector.shape_cast %30 : vector<256x4xf32> to vector<1x256x4xf32>
    %cst_18 = arith.constant dense<0.000000e+00> : vector<1xf32>
    %32 = vector.multi_reduction <add>, %31, %cst_18 [1, 2] : vector<1x256x4xf32> to vector<1xf32>
    %33 = vector.shape_cast %32 : vector<1xf32> to vector<1x1x1xf32>
    %34 = vector.extract %33[0, 0, 0] : f32 from vector<1x1x1xf32>
    %c3 = arith.constant 3 : index
    %35 = memref.load %arg12[%c3] : memref<7xf32, #tpu.memory_space<smem>>
    memref.store %34, %arg12[%c3] : memref<7xf32, #tpu.memory_space<smem>>
    %c0_19 = arith.constant 0 : index
    %c0_20 = arith.constant 0 : index
    %36 = vector.load %arg8[%c0_19, %c0_20] : memref<256x2xf32, #tpu.memory_space<vmem>>, vector<256x2xf32>
    %c0_21 = arith.constant 0 : index
    %c0_22 = arith.constant 0 : index
    %37 = vector.load %arg9[%c0_21, %c0_22] : memref<256x2xf32, #tpu.memory_space<vmem>>, vector<256x2xf32>
    %38 = arith.subf %36, %37 : vector<256x2xf32>
    %39 = math.absf %38 : vector<256x2xf32>
    %40 = vector.shape_cast %39 : vector<256x2xf32> to vector<1x256x2xf32>
    %cst_23 = arith.constant dense<0.000000e+00> : vector<1xf32>
    %41 = vector.multi_reduction <add>, %40, %cst_23 [1, 2] : vector<1x256x2xf32> to vector<1xf32>
    %42 = vector.shape_cast %41 : vector<1xf32> to vector<1x1x1xf32>
    %43 = vector.extract %42[0, 0, 0] : f32 from vector<1x1x1xf32>
    %c4 = arith.constant 4 : index
    %44 = memref.load %arg12[%c4] : memref<7xf32, #tpu.memory_space<smem>>
    memref.store %43, %arg12[%c4] : memref<7xf32, #tpu.memory_space<smem>>
    %c0_24 = arith.constant 0 : index
    %c0_25 = arith.constant 0 : index
    %45 = vector.load %arg10[%c0_24, %c0_25] : memref<8x4xf32, #tpu.memory_space<vmem>>, vector<8x4xf32>
    %46 = vector.shape_cast %45 : vector<8x4xf32> to vector<1x8x4xf32>
    %cst_26 = arith.constant dense<0.000000e+00> : vector<1xf32>
    %47 = vector.multi_reduction <add>, %46, %cst_26 [1, 2] : vector<1x8x4xf32> to vector<1xf32>
    %48 = vector.shape_cast %47 : vector<1xf32> to vector<1x1x1xf32>
    %49 = vector.extract %48[0, 0, 0] : f32 from vector<1x1x1xf32>
    %c5 = arith.constant 5 : index
    %50 = memref.load %arg12[%c5] : memref<7xf32, #tpu.memory_space<smem>>
    memref.store %49, %arg12[%c5] : memref<7xf32, #tpu.memory_space<smem>>
    %c0_27 = arith.constant 0 : index
    %c0_28 = arith.constant 0 : index
    %51 = vector.load %arg11[%c0_27, %c0_28] : memref<8x4xf32, #tpu.memory_space<vmem>>, vector<8x4xf32>
    %52 = vector.shape_cast %51 : vector<8x4xf32> to vector<1x8x4xf32>
    %cst_29 = arith.constant dense<0.000000e+00> : vector<1xf32>
    %53 = vector.multi_reduction <add>, %52, %cst_29 [1, 2] : vector<1x8x4xf32> to vector<1xf32>
    %54 = vector.shape_cast %53 : vector<1xf32> to vector<1x1x1xf32>
    %55 = vector.extract %54[0, 0, 0] : f32 from vector<1x1x1xf32>
    %c6 = arith.constant 6 : index
    %56 = memref.load %arg12[%c6] : memref<7xf32, #tpu.memory_space<smem>>
    memref.store %55, %arg12[%c6] : memref<7xf32, #tpu.memory_space<smem>>
    return
  }
}

</mosaic_0001>

<bundles_post_ra>
// kernel: fwd_with_dis.1
= control target key start
LH: loop header
LB: loop body
LE: loop exit
PB: predicated region body
PF: predicated region fallthrough
CT: control target
= control target key end

     0   :  { %vm106_vm0 = vcmask 130048   ;;  %vm479_vm1 = vcmask 64512   ;;  %vm682_vm2 = vcmask 31744   ;;  %s2121_s0 = inlined_call_operand.vmem [shape: f32[128,16], index: 0, kind: input, shape index: {}]   ;;  %s2122_s1 = inlined_call_operand.vmem [shape: f32[128,16], index: 1, kind: input, shape index: {}]   ;;  %s2123_s2 = inlined_call_operand.vmem [shape: f32[256,16], index: 2, kind: input, shape index: {}]   ;;  %s2124_s3 = inlined_call_operand.vmem [shape: f32[256,16], index: 3, kind: input, shape index: {}]   ;;  %s2125_s4 = inlined_call_operand.vmem [shape: f32[256,8], index: 4, kind: input, shape index: {}]   ;;  %s2126_s5 = inlined_call_operand.vmem [shape: f32[256,8], index: 5, kind: input, shape index: {}]   ;;  %s2127_s6 = inlined_call_operand.vmem [shape: f32[256,4], index: 6, kind: input, shape index: {}]   ;;  %s2128_s7 = inlined_call_operand.vmem [shape: f32[256,4], index: 7, kind: input, shape index: {}]   ;;  %s2129_s8 = inlined_call_operand.vmem [shape: f32[256,2], index: 8, kind: input, shape index: {}]   ;;  %s2130_s9 = inlined_call_operand.vmem [shape: f32[256,2], index: 9, kind: input, shape index: {}]   ;;  %s2131_s10 = inlined_call_operand.vmem [shape: f32[8,4], index: 10, kind: input, shape index: {}]   ;;  %s2132_s11 = inlined_call_operand.vmem [shape: f32[8,4], index: 11, kind: input, shape index: {}]   ;;  %s2133_s12 = inlined_call_operand.vmem [shape: f32[7], index: 12, kind: output, shape index: {}]  }
   0x1   :  { %v42_v0 = vld [vmem:[%s2121_s0] sm:$0xff]  ;;  %v43_v1 = vld [vmem:[%s2121_s0 + $0x8] sm:$0xff]  ;;  %v44_v2 = vld [vmem:[%s2121_s0 + $0x10] sm:$0xff] }
   0x2   :  { %v58_v3 = vld [vmem:[%s2122_s1] sm:$0xff]  ;;  %v59_v4 = vld [vmem:[%s2122_s1 + $0x8] sm:$0xff]  ;;  %v45_v5 = vld [vmem:[%s2121_s0 + $0x18] sm:$0xff] }
   0x3   :  { %v60_v6 = vld [vmem:[%s2122_s1 + $0x10] sm:$0xff]  ;;  %v61_v7 = vld [vmem:[%s2122_s1 + $0x18] sm:$0xff]  ;;  %v74_v8 = vsub.f32 %v42_v0, %v58_v3  ;;  %v75_v9 = vsub.f32 %v43_v1, %v59_v4  ;;  %v46_v10 = vld [vmem:[%s2121_s0 + $0x20] sm:$0xff] }
   0x4   :  { %v62_v11 = vld [vmem:[%s2122_s1 + $0x20] sm:$0xff]  ;;  %v76_v12 = vsub.f32 %v44_v2, %v60_v6  ;;  %v77_v13 = vsub.f32 %v45_v5, %v61_v7  ;;  %v47_v14 = vld [vmem:[%s2121_s0 + $0x28] sm:$0xff]  ;;  %v48_v19 = vld [vmem:[%s2121_s0 + $0x30] sm:$0xff] }
   0x5   :  { %v63_v15 = vld [vmem:[%s2122_s1 + $0x28] sm:$0xff]  ;;  %v78_v16 = vsub.f32 %v46_v10, %v62_v11  ;;  %v90_v17 = vand.u32 2147483647, %v74_v8  ;;  %v91_v18 = vand.u32 2147483647, %v75_v9  ;;  %v64_v20 = vld [vmem:[%s2122_s1 + $0x30] sm:$0xff] }
   0x6   :  { %v92_v21 = vand.u32 2147483647, %v76_v12  ;;  %v79_v22 = vsub.f32 %v47_v14, %v63_v15  ;;  %v93_v23 = vand.u32 2147483647, %v77_v13  ;;  %v49_v24 = vld [vmem:[%s2121_s0 + $0x38] sm:$0xff]  ;;  %v80_v26 = vsub.f32 %v48_v19, %v64_v20  ;;  %v50_v30 = vld [vmem:[%s2121_s0 + $0x40] sm:$0xff] }
   0x7   :  { %v65_v25 = vld [vmem:[%s2122_s1 + $0x38] sm:$0xff]  ;;  %v94_v27 = vand.u32 2147483647, %v78_v16  ;;  %v107_v28 = vsel %vm106_vm0, %v90_v17, 0.0  ;;  %v108_v29 = vsel %vm106_vm0, %v91_v18, 0.0  ;;  %v66_v31 = vld [vmem:[%s2122_s1 + $0x40] sm:$0xff] }
   0x8   :  { %v109_v32 = vadd.f32 %v108_v29, %v107_v28  ;;  %v110_v33 = vsel %vm106_vm0, %v92_v21, 0.0  ;;  %v81_v34 = vsub.f32 %v49_v24, %v65_v25  ;;  %v95_v35 = vand.u32 2147483647, %v79_v22  ;;  %v51_v37 = vld [vmem:[%s2121_s0 + $0x48] sm:$0xff]  ;;  %v52_v43 = vld [vmem:[%s2121_s0 + $0x50] sm:$0xff]  ;;  %v53_v49 = vld [vmem:[%s2121_s0 + $0x58] sm:$0xff] }
   0x9   :  { %v112_v36 = vsel %vm106_vm0, %v93_v23, 0.0  ;;  %v67_v38 = vld [vmem:[%s2122_s1 + $0x48] sm:$0xff]  ;;  %v82_v40 = vsub.f32 %v50_v30, %v66_v31  ;;  %v96_v41 = vand.u32 2147483647, %v80_v26  ;;  %v114_v42 = vsel %vm106_vm0, %v94_v27, 0.0  ;;  %v68_v44 = vld [vmem:[%s2122_s1 + $0x50] sm:$0xff] }
   0xa   :  { %v111_v39 = vadd.f32 %v110_v33, %v109_v32  ;;  %v83_v46 = vsub.f32 %v51_v37, %v67_v38  ;;  %v97_v47 = vand.u32 2147483647, %v81_v34  ;;  %v116_v48 = vsel %vm106_vm0, %v95_v35, 0.0  ;;  %v69_v50 = vld [vmem:[%s2122_s1 + $0x58] sm:$0xff]  ;;  %v54_v55 = vld [vmem:[%s2121_s0 + $0x60] sm:$0xff]  ;;  %v55_v61 = vld [vmem:[%s2121_s0 + $0x68] sm:$0xff] }
   0xb   :  { %v84_v52 = vsub.f32 %v52_v43, %v68_v44  ;;  %v98_v53 = vand.u32 2147483647, %v82_v40  ;;  %v118_v54 = vsel %vm106_vm0, %v96_v41, 0.0  ;;  %v70_v56 = vld [vmem:[%s2122_s1 + $0x60] sm:$0xff]  ;;  %v85_v58 = vsub.f32 %v53_v49, %v69_v50  ;;  %v71_v62 = vld [vmem:[%s2122_s1 + $0x68] sm:$0xff]  ;;  %v56_v3 = vld [vmem:[%s2121_s0 + $0x70] sm:$0xff] }
   0xc   :  { %v113_v45 = vadd.f32 %v112_v36, %v111_v39  ;;  %v99_v59 = vand.u32 2147483647, %v83_v46  ;;  %v120_v60 = vsel %vm106_vm0, %v97_v47, 0.0  ;;  %v86_v0 = vsub.f32 %v54_v55, %v70_v56  ;;  %v72_v4 = vld [vmem:[%s2122_s1 + $0x70] sm:$0xff]  ;;  %v57_v9 = vld [vmem:[%s2121_s0 + $0x78] sm:$0xff]  ;;  %v351_v22 = vld [vmem:[%s2125_s4] sm:$0xff] }
   0xd   :  { %v100_v1 = vand.u32 2147483647, %v84_v52  ;;  %v122_v2 = vsel %vm106_vm0, %v98_v53, 0.0  ;;  %v87_v6 = vsub.f32 %v55_v61, %v71_v62  ;;  %v101_v7 = vand.u32 2147483647, %v85_v58  ;;  %v73_v10 = vld [vmem:[%s2122_s1 + $0x78] sm:$0xff] }
   0xe   :  { %v115_v51 = vadd.f32 %v114_v42, %v113_v45  ;;  %v124_v8 = vsel %vm106_vm0, %v99_v59, 0.0  ;;  %v88_v12 = vsub.f32 %v56_v3, %v72_v4  ;;  %v102_v13 = vand.u32 2147483647, %v86_v0  ;;  %v352_v23 = vld [vmem:[%s2125_s4 + $0x8] sm:$0xff]  ;;  %v353_v24 = vld [vmem:[%s2125_s4 + $0x10] sm:$0xff]  ;;  %v383_v26 = vld [vmem:[%s2126_s5] sm:$0xff] }
   0xf   :  { %v126_v14 = vsel %vm106_vm0, %v100_v1, 0.0  ;;  %v89_v16 = vsub.f32 %v57_v9, %v73_v10  ;;  %v103_v17 = vand.u32 2147483647, %v87_v6  ;;  %v128_v18 = vsel %vm106_vm0, %v101_v7, 0.0  ;;  %v384_v27 = vld [vmem:[%s2126_s5 + $0x8] sm:$0xff]  ;;  %v385_v28 = vld [vmem:[%s2126_s5 + $0x10] sm:$0xff] }
  0x10   :  { %v117_v57 = vadd.f32 %v116_v48, %v115_v51  ;;  %v104_v20 = vand.u32 2147483647, %v88_v12  ;;  %v130_v21 = vsel %vm106_vm0, %v102_v13, 0.0  ;;  %v354_v32 = vld [vmem:[%s2125_s4 + $0x18] sm:$0xff]  ;;  %v415_v35 = vsub.f32 %v351_v22, %v383_v26  ;;  %v355_v39 = vld [vmem:[%s2125_s4 + $0x20] sm:$0xff]  ;;  %v356_v42 = vld [vmem:[%s2125_s4 + $0x28] sm:$0xff] }
  0x11   :  { %v105_v29 = vand.u32 2147483647, %v89_v16  ;;  %v132_v30 = vsel %vm106_vm0, %v103_v17, 0.0  ;;  %v386_v33 = vld [vmem:[%s2126_s5 + $0x18] sm:$0xff]  ;;  %v416_v36 = vsub.f32 %v352_v23, %v384_v27  ;;  %v417_v37 = vsub.f32 %v353_v24, %v385_v28  ;;  %v387_v40 = vld [vmem:[%s2126_s5 + $0x20] sm:$0xff]  ;;  %v357_v45 = vld [vmem:[%s2125_s4 + $0x30] sm:$0xff] }
  0x12   :  { %v119_v63 = vadd.f32 %v118_v54, %v117_v57  ;;  %v134_v34 = vsel %vm106_vm0, %v104_v20, 0.0  ;;  %v418_v43 = vsub.f32 %v354_v32, %v386_v33  ;;  %v388_v46 = vld [vmem:[%s2126_s5 + $0x28] sm:$0xff]  ;;  %v389_v47 = vld [vmem:[%s2126_s5 + $0x30] sm:$0xff]  ;;  %v419_v48 = vsub.f32 %v355_v39, %v387_v40  ;;  %v358_v55 = vld [vmem:[%s2125_s4 + $0x38] sm:$0xff] }
  0x13   :  { %v136_v41 = vsel %vm106_vm0, %v105_v29, 0.0  ;;  %v447_v49 = vand.u32 2147483647, %v415_v35  ;;  %v448_v50 = vand.u32 2147483647, %v416_v36  ;;  %v420_v53 = vsub.f32 %v356_v42, %v388_v46  ;;  %v390_v56 = vld [vmem:[%s2126_s5 + $0x38] sm:$0xff] }
  0x14   :  { %v121_v5 = vadd.f32 %v120_v60, %v119_v63  ;;  %v449_v51 = vand.u32 2147483647, %v417_v37  ;;  %v450_v54 = vand.u32 2147483647, %v418_v43  ;;  %v421_v57 = vsub.f32 %v357_v45, %v389_v47  ;;  %v359_v62 = vld [vmem:[%s2125_s4 + $0x40] sm:$0xff]  ;;  %v360_v4 = vld [vmem:[%s2125_s4 + $0x48] sm:$0xff] }
  0x15   :  { %v451_v58 = vand.u32 2147483647, %v419_v48  ;;  %v480_v59 = vsel %vm479_vm1, %v447_v49, 0.0  ;;  %v481_v60 = vsel %vm479_vm1, %v448_v50, 0.0  ;;  %v391_v63 = vld [vmem:[%s2126_s5 + $0x40] sm:$0xff]  ;;  %v422_v1 = vsub.f32 %v358_v55, %v390_v56  ;;  %v361_v10 = vld [vmem:[%s2125_s4 + $0x50] sm:$0xff] }
  0x16   :  { %v123_v11 = vadd.f32 %v122_v2, %v121_v5  ;;  %v483_v61 = vsel %vm479_vm1, %v449_v51, 0.0  ;;  %v482_v0 = vadd.f32 %v481_v60, %v480_v59  ;;  %v452_v2 = vand.u32 2147483647, %v420_v53  ;;  %v392_v5 = vld [vmem:[%s2126_s5 + $0x48] sm:$0xff]  ;;  %v362_v16 = vld [vmem:[%s2125_s4 + $0x58] sm:$0xff]  ;;  %v363_v22 = vld [vmem:[%s2125_s4 + $0x60] sm:$0xff] }
  0x17   :  { %v485_v3 = vsel %vm479_vm1, %v450_v54, 0.0  ;;  %v423_v7 = vsub.f32 %v359_v62, %v391_v63  ;;  %v487_v9 = vsel %vm479_vm1, %v451_v58, 0.0  ;;  %v424_v13 = vsub.f32 %v360_v4, %v392_v5  ;;  %v394_v17 = vld [vmem:[%s2126_s5 + $0x58] sm:$0xff]  ;;  %v395_v23 = vld [vmem:[%s2126_s5 + $0x60] sm:$0xff]  ;;  %v364_v28 = vld [vmem:[%s2125_s4 + $0x68] sm:$0xff] }
  0x18   :  { %v125_v15 = vadd.f32 %v124_v8, %v123_v11  ;;  %v484_v6 = vadd.f32 %v483_v61, %v482_v0  ;;  %v453_v8 = vand.u32 2147483647, %v421_v57  ;;  %v393_v11 = vld [vmem:[%s2126_s5 + $0x50] sm:$0xff]  ;;  %v396_v29 = vld [vmem:[%s2126_s5 + $0x68] sm:$0xff]  ;;  %v366_v40 = vld [vmem:[%s2125_s4 + $0x78] sm:$0xff] }
  0x19   :  { %v455_v20 = vand.u32 2147483647, %v423_v7  ;;  %v456_v26 = vand.u32 2147483647, %v424_v13  ;;  %v397_v35 = vld [vmem:[%s2126_s5 + $0x70] sm:$0xff]  ;;  %v428_v37 = vsub.f32 %v364_v28, %v396_v29  ;;  %v367_v43 = vld [vmem:[%s2125_s4 + $0x80] sm:$0xff] }
  0x1a   :  { %v127_v19 = vadd.f32 %v126_v14, %v125_v15  ;;  %v486_v12 = vadd.f32 %v485_v3, %v484_v6  ;;  %v454_v14 = vand.u32 2147483647, %v422_v1  ;;  %v489_v15 = vsel %vm479_vm1, %v452_v2, 0.0  ;;  %v368_v49 = vld [vmem:[%s2125_s4 + $0x88] sm:$0xff]  ;;  %v369_v53 = vld [vmem:[%s2125_s4 + $0x90] sm:$0xff]  ;;  %v149_v60 = vld [vmem:[%s2123_s2] sm:$0xff] }
  0x1b   :  { %v495_v33 = vsel %vm479_vm1, %v455_v20, 0.0  ;;  %v497_v39 = vsel %vm479_vm1, %v456_v26, 0.0  ;;  %v460_v51 = vand.u32 2147483647, %v428_v37  ;;  %v400_v54 = vld [vmem:[%s2126_s5 + $0x88] sm:$0xff]  ;;  %v401_v55 = vld [vmem:[%s2126_s5 + $0x90] sm:$0xff] }
  0x1c   :  { %v129_v25 = vadd.f32 %v128_v18, %v127_v19  ;;  %v488_v18 = vadd.f32 %v487_v9, %v486_v12  ;;  %v425_v19 = vsub.f32 %v361_v10, %v393_v11  ;;  %v493_v27 = vsel %vm479_vm1, %v454_v14, 0.0  ;;  %v150_v61 = vld [vmem:[%s2123_s2 + $0x8] sm:$0xff]  ;;  %v151_v62 = vld [vmem:[%s2123_s2 + $0x10] sm:$0xff]  ;;  %v181_v0 = vld [vmem:[%s2124_s3] sm:$0xff] }
  0x1d   :  { %v182_v1 = vld [vmem:[%s2124_s3 + $0x8] sm:$0xff]  ;;  %v183_v2 = vld [vmem:[%s2124_s3 + $0x10] sm:$0xff]  ;;  %v370_v3 = vld [vmem:[%s2125_s4 + $0x98] sm:$0xff]  ;;  %v432_v4 = vsub.f32 %v368_v49, %v400_v54  ;;  %v505_v6 = vsel %vm479_vm1, %v460_v51, 0.0 }
  0x1e   :  { %v131_v31 = vadd.f32 %v130_v21, %v129_v25  ;;  %v491_v21 = vsel %vm479_vm1, %v453_v8, 0.0  ;;  %v490_v24 = vadd.f32 %v489_v15, %v488_v18  ;;  %v426_v25 = vsub.f32 %v362_v16, %v394_v17  ;;  %v402_v7 = vld [vmem:[%s2126_s5 + $0x98] sm:$0xff]  ;;  %v371_v13 = vld [vmem:[%s2125_s4 + $0xa0] sm:$0xff]  ;;  %v372_v14 = vld [vmem:[%s2125_s4 + $0xa8] sm:$0xff] }
  0x1f   :  { %v457_v32 = vand.u32 2147483647, %v425_v19  ;;  %v433_v8 = vsub.f32 %v369_v53, %v401_v55  ;;  %v152_v11 = vld [vmem:[%s2123_s2 + $0x18] sm:$0xff]  ;;  %v403_v15 = vld [vmem:[%s2126_s5 + $0xa0] sm:$0xff]  ;;  %v213_v17 = vsub.f32 %v149_v60, %v181_v0  ;;  %v214_v18 = vsub.f32 %v150_v61, %v182_v1  ;;  %v373_v20 = vld [vmem:[%s2125_s4 + $0xb0] sm:$0xff] }
  0x20   :  { %v133_v38 = vadd.f32 %v132_v30, %v131_v31  ;;  %v492_v30 = vadd.f32 %v491_v21, %v490_v24  ;;  %v427_v31 = vsub.f32 %v363_v22, %v395_v23  ;;  %v184_v12 = vld [vmem:[%s2124_s3 + $0x18] sm:$0xff]  ;;  %v215_v19 = vsub.f32 %v151_v62, %v183_v2  ;;  %v153_v22 = vld [vmem:[%s2123_s2 + $0x20] sm:$0xff]  ;;  %v404_v24 = vld [vmem:[%s2126_s5 + $0xa8] sm:$0xff] }
  0x21   :  { %v499_v47 = vsel %vm479_vm1, %v457_v32, 0.0  ;;  %v185_v23 = vld [vmem:[%s2124_s3 + $0x20] sm:$0xff]  ;;  %v434_v26 = vsub.f32 %v370_v3, %v402_v7  ;;  %v154_v29 = vld [vmem:[%s2123_s2 + $0x28] sm:$0xff]  ;;  %v465_v32 = vand.u32 2147483647, %v433_v8  ;;  %v187_v37 = vld [vmem:[%s2124_s3 + $0x30] sm:$0xff] }
  0x22   :  { %v135_v44 = vadd.f32 %v134_v34, %v133_v38  ;;  %v365_v34 = vld [vmem:[%s2125_s4 + $0x70] sm:$0xff]  ;;  %v494_v36 = vadd.f32 %v493_v27, %v492_v30  ;;  %v458_v38 = vand.u32 2147483647, %v426_v25  ;;  %v459_v46 = vand.u32 2147483647, %v427_v31  ;;  %v375_v51 = vld [vmem:[%s2125_s4 + $0xc0] sm:$0xff] }
  0x23   :  { %v429_v45 = vsub.f32 %v365_v34, %v397_v35  ;;  %v405_v25 = vld [vmem:[%s2126_s5 + $0xb0] sm:$0xff]  ;;  %v464_v27 = vand.u32 2147483647, %v432_v4  ;;  %v216_v30 = vsub.f32 %v152_v11, %v184_v12  ;;  %v435_v31 = vsub.f32 %v371_v13, %v403_v15  ;;  %v156_v55 = vld [vmem:[%s2123_s2 + $0x38] sm:$0xff]  ;;  %v157_v2 = vld [vmem:[%s2123_s2 + $0x40] sm:$0xff] }
  0x24   :  { %v137_v52 = vadd.f32 %v136_v41, %v135_v44  ;;  %v398_v41 = vld [vmem:[%s2126_s5 + $0x78] sm:$0xff]  ;;  %v496_v42 = vadd.f32 %v495_v33, %v494_v36  ;;  %v399_v44 = vld [vmem:[%s2126_s5 + $0x80] sm:$0xff]  ;;  %v503_v59 = vsel %vm479_vm1, %v459_v46, 0.0  ;;  %v155_v35 = vld [vmem:[%s2123_s2 + $0x30] sm:$0xff]  ;;  %v515_v54 = vsel %vm479_vm1, %v465_v32, 0.0 }
  0x25   :  { %v430_v50 = vsub.f32 %v366_v40, %v398_v41  ;;  %v431_v56 = vsub.f32 %v367_v43, %v399_v44  ;;  %v461_v58 = vand.u32 2147483647, %v429_v45  ;;  %v186_v36 = vld [vmem:[%s2124_s3 + $0x28] sm:$0xff]  ;;  %v246_v40 = vand.u32 2147483647, %v214_v18  ;;  %v406_v46 = vld [vmem:[%s2126_s5 + $0xb8] sm:$0xff] }
  0x26   :  { %138 = vadd.xlane.f32.xlu0 %v137_v52  ;;  %v498_v48 = vadd.f32 %v497_v39, %v496_v42  ;;  %v501_v52 = vsel %vm479_vm1, %v458_v38, 0.0  ;;  %v217_v38 = vsub.f32 %v153_v22, %v185_v23  ;;  %v245_v39 = vand.u32 2147483647, %v213_v17  ;;  %v374_v42 = vld [vmem:[%s2125_s4 + $0xb8] sm:$0xff]  ;;  %v189_v3 = vld [vmem:[%s2124_s3 + $0x40] sm:$0xff]  ;;  %v190_v15 = vld [vmem:[%s2124_s3 + $0x48] sm:$0xff] }
  0x27   :  { %v462_v5 = vand.u32 2147483647, %v430_v50  ;;  %v463_v9 = vand.u32 2147483647, %v431_v56  ;;  %v507_v16 = vsel %vm479_vm1, %v461_v58, 0.0  ;;  %v436_v43 = vsub.f32 %v372_v14, %v404_v24  ;;  %v188_v56 = vld [vmem:[%s2124_s3 + $0x38] sm:$0xff] }
  0x28   :  { %v500_v57 = vadd.f32 %v499_v47, %v498_v48  ;;  %v247_v41 = vand.u32 2147483647, %v215_v19  ;;  %v437_v44 = vsub.f32 %v373_v20, %v405_v25  ;;  %v466_v47 = vand.u32 2147483647, %v434_v26  ;;  %v407_v58 = vld [vmem:[%s2126_s5 + $0xc0] sm:$0xff]  ;;  %v158_v14 = vld [vmem:[%s2123_s2 + $0x48] sm:$0xff] }
  0x29   :  { %v509_v28 = vsel %vm479_vm1, %v462_v5, 0.0  ;;  %v511_v34 = vsel %vm479_vm1, %v463_v9, 0.0  ;;  %v513_v48 = vsel %vm479_vm1, %v464_v27, 0.0  ;;  %v218_v49 = vsub.f32 %v154_v29, %v186_v36  ;;  %v376_v5 = vld [vmem:[%s2125_s4 + $0xc8] sm:$0xff]  ;;  %v377_v17 = vld [vmem:[%s2125_s4 + $0xd0] sm:$0xff]  ;;  %v378_v29 = vld [vmem:[%s2125_s4 + $0xd8] sm:$0xff] }
  0x2a   :  { %v502_v63 = vadd.f32 %v501_v52, %v500_v57  ;;  %v248_v50 = vand.u32 2147483647, %v216_v30  ;;  %v467_v52 = vand.u32 2147483647, %v435_v31  ;;  %v219_v57 = vsub.f32 %v155_v35, %v187_v37  ;;  %v409_v18 = vld [vmem:[%s2126_s5 + $0xd0] sm:$0xff]  ;;  %v410_v30 = vld [vmem:[%s2126_s5 + $0xd8] sm:$0xff] }
  0x2b   :  { %v277_v60 = vsel %vm106_vm0, %v245_v39, 0.0  ;;  %v278_v61 = vsel %vm106_vm0, %v246_v40, 0.0  ;;  %v280_v62 = vsel %vm106_vm0, %v247_v41, 0.0  ;;  %v468_v0 = vand.u32 2147483647, %v436_v43  ;;  %v159_v26 = vld [vmem:[%s2123_s2 + $0x50] sm:$0xff] }
  0x2c   :  { %v504_v10 = vadd.f32 %v503_v59, %v502_v63  ;;  %v249_v59 = vand.u32 2147483647, %v217_v38  ;;  %v438_v63 = vsub.f32 %v374_v42, %v406_v46  ;;  %v279_v4 = vadd.f32 %v278_v61, %v277_v60  ;;  %v191_v27 = vld [vmem:[%s2124_s3 + $0x50] sm:$0xff]  ;;  %v160_v38 = vld [vmem:[%s2123_s2 + $0x58] sm:$0xff]  ;;  %v379_v41 = vld [vmem:[%s2125_s4 + $0xe0] sm:$0xff] }
  0x2d   :  { %v517_v7 = vsel %vm479_vm1, %v466_v47, 0.0  ;;  %v220_v8 = vsub.f32 %v156_v55, %v188_v56  ;;  %v250_v9 = vand.u32 2147483647, %v218_v49  ;;  %v439_v11 = vsub.f32 %v375_v51, %v407_v58  ;;  %v192_v39 = vld [vmem:[%s2124_s3 + $0x58] sm:$0xff]  ;;  %v411_v42 = vld [vmem:[%s2126_s5 + $0xe0] sm:$0xff] }
  0x2e   :  { %v506_v21 = vadd.f32 %v505_v6, %v504_v10  ;;  %v408_v6 = vld [vmem:[%s2126_s5 + $0xc8] sm:$0xff]  ;;  %v282_v10 = vsel %vm106_vm0, %v248_v50, 0.0  ;;  %v469_v12 = vand.u32 2147483647, %v437_v44  ;;  %v519_v19 = vsel %vm479_vm1, %v467_v52, 0.0  ;;  %v161_v50 = vld [vmem:[%s2123_s2 + $0x60] sm:$0xff] }
  0x2f   :  { %v221_v20 = vsub.f32 %v157_v2, %v189_v3  ;;  %v284_v22 = vsel %vm106_vm0, %v249_v59, 0.0  ;;  %v440_v23 = vsub.f32 %v376_v5, %v408_v6  ;;  %v470_v24 = vand.u32 2147483647, %v438_v63  ;;  %v193_v51 = vld [vmem:[%s2124_s3 + $0x60] sm:$0xff]  ;;  %v194_v63 = vld [vmem:[%s2124_s3 + $0x68] sm:$0xff]  ;;  %v413_v2 = vld [vmem:[%s2126_s5 + $0xf0] sm:$0xff] }
  0x30   :  { %v508_v33 = vadd.f32 %v507_v16, %v506_v21  ;;  %v281_v16 = vadd.f32 %v280_v62, %v279_v4  ;;  %v251_v21 = vand.u32 2147483647, %v219_v57  ;;  %v521_v31 = vsel %vm479_vm1, %v468_v0, 0.0  ;;  %v162_v62 = vld [vmem:[%s2123_s2 + $0x68] sm:$0xff] }
  0x31   :  { %v222_v32 = vsub.f32 %v158_v14, %v190_v15  ;;  %v441_v35 = vsub.f32 %v377_v17, %v409_v18  ;;  %v471_v36 = vand.u32 2147483647, %v439_v11  ;;  %v523_v43 = vsel %vm479_vm1, %v469_v12, 0.0  ;;  %v195_v11 = vld [vmem:[%s2124_s3 + $0x70] sm:$0xff]  ;;  %v414_v14 = vld [vmem:[%s2126_s5 + $0xf8] sm:$0xff] }
  0x32   :  { %v510_v45 = vadd.f32 %v509_v28, %v508_v33  ;;  %v283_v28 = vadd.f32 %v282_v10, %v281_v16  ;;  %v252_v33 = vand.u32 2147483647, %v220_v8  ;;  %v223_v44 = vsub.f32 %v159_v26, %v191_v27  ;;  %v163_v10 = vld [vmem:[%s2123_s2 + $0x70] sm:$0xff] }
  0x33   :  { %v288_v46 = vsel %vm106_vm0, %v251_v21, 0.0  ;;  %v442_v47 = vsub.f32 %v378_v29, %v410_v30  ;;  %v525_v55 = vsel %vm479_vm1, %v470_v24, 0.0  ;;  %v224_v56 = vsub.f32 %v160_v38, %v192_v39 }
  0x34   :  { %v512_v53 = vadd.f32 %v511_v34, %v510_v45  ;;  %v286_v34 = vsel %vm106_vm0, %v250_v9, 0.0  ;;  %v285_v40 = vadd.f32 %v284_v22, %v283_v28  ;;  %v253_v45 = vand.u32 2147483647, %v221_v20  ;;  %v164_v22 = vld [vmem:[%s2123_s2 + $0x78] sm:$0xff] }
  0x35   :  { %v254_v57 = vand.u32 2147483647, %v222_v32  ;;  %v290_v58 = vsel %vm106_vm0, %v252_v33, 0.0  ;;  %v443_v59 = vsub.f32 %v379_v41, %v411_v42  ;;  %v473_v60 = vand.u32 2147483647, %v441_v35  ;;  %v165_v32 = vld [vmem:[%s2123_s2 + $0x80] sm:$0xff] }
  0x36   :  { %v514_v1 = vadd.f32 %v513_v48, %v512_v53  ;;  %v472_v48 = vand.u32 2147483647, %v440_v23  ;;  %v287_v52 = vadd.f32 %v286_v34, %v285_v40  ;;  %v380_v53 = vld [vmem:[%s2125_s4 + $0xe8] sm:$0xff]  ;;  %v527_v3 = vsel %vm479_vm1, %v471_v36, 0.0  ;;  %v196_v23 = vld [vmem:[%s2124_s3 + $0x78] sm:$0xff]  ;;  %v197_v33 = vld [vmem:[%s2124_s3 + $0x80] sm:$0xff] }
  0x37   :  { %v225_v4 = vsub.f32 %v161_v50, %v193_v51  ;;  %v255_v5 = vand.u32 2147483647, %v223_v44  ;;  %v292_v6 = vsel %vm106_vm0, %v253_v45, 0.0  ;;  %v474_v8 = vand.u32 2147483647, %v442_v47  ;;  %v166_v41 = vld [vmem:[%s2123_s2 + $0x88] sm:$0xff] }
  0x38   :  { %v516_v13 = vadd.f32 %v515_v54, %v514_v1  ;;  %v412_v54 = vld [vmem:[%s2126_s5 + $0xe8] sm:$0xff]  ;;  %v289_v0 = vadd.f32 %v288_v46, %v287_v52  ;;  %v381_v1 = vld [vmem:[%s2125_s4 + $0xf0] sm:$0xff]  ;;  %v529_v15 = vsel %vm479_vm1, %v472_v48, 0.0  ;;  %v226_v16 = vsub.f32 %v162_v62, %v194_v63  ;;  %v554_v62 = vld [vmem:[%s2127_s6] sm:$0xff] }
  0x39   :  { %v256_v17 = vand.u32 2147483647, %v224_v56  ;;  %v294_v18 = vsel %vm106_vm0, %v254_v57, 0.0  ;;  %v475_v20 = vand.u32 2147483647, %v443_v59  ;;  %v227_v26 = vsub.f32 %v163_v10, %v195_v11  ;;  %v198_v42 = vld [vmem:[%s2124_s3 + $0x88] sm:$0xff] }
  0x3a   :  { %v518_v25 = vadd.f32 %v517_v7, %v516_v13  ;;  %v444_v7 = vsub.f32 %v380_v53, %v412_v54  ;;  %v291_v12 = vadd.f32 %v290_v58, %v289_v0  ;;  %v382_v13 = vld [vmem:[%s2125_s4 + $0xf8] sm:$0xff]  ;;  %v257_v27 = vand.u32 2147483647, %v225_v4  ;;  %v167_v50 = vld [vmem:[%s2123_s2 + $0x90] sm:$0xff]  ;;  %v555_v63 = vld [vmem:[%s2127_s6 + $0x8] sm:$0xff] }
  0x3b   :  { %v296_v28 = vsel %vm106_vm0, %v255_v5, 0.0  ;;  %v446_v29 = vsub.f32 %v382_v13, %v414_v14  ;;  %v533_v35 = vsel %vm479_vm1, %v474_v8, 0.0  ;;  %v228_v36 = vsub.f32 %v164_v22, %v196_v23  ;;  %v199_v51 = vld [vmem:[%s2124_s3 + $0x90] sm:$0xff]  ;;  %v168_v54 = vld [vmem:[%s2123_s2 + $0x98] sm:$0xff]  ;;  %v586_v0 = vld [vmem:[%s2128_s7] sm:$0xff] }
  0x3c   :  { %v520_v37 = vadd.f32 %v519_v19, %v518_v25  ;;  %v445_v19 = vsub.f32 %v381_v1, %v413_v2  ;;  %v293_v24 = vadd.f32 %v292_v6, %v291_v12  ;;  %v531_v25 = vsel %vm479_vm1, %v473_v60, 0.0  ;;  %v556_v4 = vld [vmem:[%s2127_s6 + $0x10] sm:$0xff]  ;;  %v587_v5 = vld [vmem:[%s2128_s7 + $0x8] sm:$0xff]  ;;  %v201_v11 = vld [vmem:[%s2124_s3 + $0xa0] sm:$0xff] }
  0x3d   :  { %v476_v30 = vand.u32 2147483647, %v444_v7  ;;  %v298_v38 = vsel %vm106_vm0, %v256_v17, 0.0  ;;  %v535_v44 = vsel %vm479_vm1, %v475_v20, 0.0  ;;  %v229_v45 = vsub.f32 %v165_v32, %v197_v33  ;;  %v588_v6 = vld [vmem:[%s2128_s7 + $0x10] sm:$0xff]  ;;  %v170_v10 = vld [vmem:[%s2123_s2 + $0xa8] sm:$0xff] }
  0x3e   :  { %v522_v49 = vadd.f32 %v521_v31, %v520_v37  ;;  %v295_v34 = vadd.f32 %v294_v18, %v293_v24  ;;  %v258_v37 = vand.u32 2147483647, %v226_v16  ;;  %v477_v39 = vand.u32 2147483647, %v445_v19  ;;  %v202_v13 = vld [vmem:[%s2124_s3 + $0xa8] sm:$0xff]  ;;  %v557_v17 = vld [vmem:[%s2127_s6 + $0x18] sm:$0xff] }
  0x3f   :  { %v259_v46 = vand.u32 2147483647, %v227_v26  ;;  %v300_v47 = vsel %vm106_vm0, %v257_v27, 0.0  ;;  %v478_v48 = vand.u32 2147483647, %v446_v29  ;;  %v537_v53 = vsel %vm479_vm1, %v476_v30, 0.0 }
  0x40   :  { %v524_v61 = vadd.f32 %v523_v43, %v522_v49  ;;  %v297_v43 = vadd.f32 %v296_v28, %v295_v34  ;;  %v230_v56 = vsub.f32 %v166_v41, %v198_v42  ;;  %v260_v57 = vand.u32 2147483647, %v228_v36  ;;  %v589_v18 = vld [vmem:[%s2128_s7 + $0x18] sm:$0xff]  ;;  %v558_v22 = vld [vmem:[%s2127_s6 + $0x20] sm:$0xff]  ;;  %v171_v26 = vld [vmem:[%s2123_s2 + $0xb0] sm:$0xff] }
  0x41   :  { %v302_v58 = vsel %vm106_vm0, %v258_v37, 0.0  ;;  %v539_v60 = vsel %vm479_vm1, %v477_v39, 0.0  ;;  %v231_v1 = vsub.f32 %v167_v50, %v199_v51  ;;  %v261_v2 = vand.u32 2147483647, %v229_v45  ;;  %v590_v23 = vld [vmem:[%s2128_s7 + $0x20] sm:$0xff]  ;;  %v172_v27 = vld [vmem:[%s2123_s2 + $0xb8] sm:$0xff] }
  0x42   :  { %v526_v9 = vadd.f32 %v525_v55, %v524_v61  ;;  %v299_v52 = vadd.f32 %v298_v38, %v297_v43  ;;  %v200_v55 = vld [vmem:[%s2124_s3 + $0x98] sm:$0xff]  ;;  %v541_v8 = vsel %vm479_vm1, %v478_v48, 0.0  ;;  %v306_v16 = vsel %vm106_vm0, %v260_v57, 0.0  ;;  %v203_v28 = vld [vmem:[%s2124_s3 + $0xb0] sm:$0xff]  ;;  %v1623_v33 = vld [vmem:[%s2123_s2 + $0xc0] sm:$0xff] }
  0x43   :  { %v232_v14 = vsub.f32 %v168_v54, %v200_v55  ;;  %v618_v19 = vsub.f32 %v554_v62, %v586_v0  ;;  %v619_v24 = vsub.f32 %v555_v63, %v587_v5  ;;  %v263_v30 = vand.u32 2147483647, %v231_v1  ;;  %v204_v34 = vld [vmem:[%s2124_s3 + $0xb8] sm:$0xff]  ;;  %v559_v38 = vld [vmem:[%s2127_s6 + $0x28] sm:$0xff]  ;;  %v560_v42 = vld [vmem:[%s2127_s6 + $0x30] sm:$0xff] }
  0x44   :  { %v528_v21 = vadd.f32 %v527_v3, %v526_v9  ;;  %v301_v61 = vadd.f32 %v300_v47, %v299_v52  ;;  %v304_v3 = vsel %vm106_vm0, %v259_v46, 0.0  ;;  %v169_v9 = vld [vmem:[%s2123_s2 + $0xa0] sm:$0xff]  ;;  %v234_v36 = vsub.f32 %v170_v10, %v202_v13  ;;  %v591_v43 = vld [vmem:[%s2128_s7 + $0x28] sm:$0xff]  ;;  %v561_v62 = vld [vmem:[%s2127_s6 + $0x38] sm:$0xff] }
  0x45   :  { %v233_v29 = vsub.f32 %v169_v9, %v201_v11  ;;  %v621_v39 = vsub.f32 %v557_v17, %v589_v18  ;;  %v622_v45 = vsub.f32 %v558_v22, %v590_v23  ;;  %v650_v47 = vand.u32 2147483647, %v618_v19  ;;  %v174_v54 = vld [vmem:[%s2123_s2 + $0xc8] sm:$0xff]  ;;  %v593_v63 = vld [vmem:[%s2128_s7 + $0x38] sm:$0xff]  ;;  %v562_v11 = vld [vmem:[%s2127_s6 + $0x40] sm:$0xff] }
  0x46   :  { %v530_v31 = vadd.f32 %v529_v15, %v528_v21  ;;  %v303_v12 = vadd.f32 %v302_v58, %v301_v61  ;;  %v262_v15 = vand.u32 2147483647, %v230_v56  ;;  %v651_v48 = vand.u32 2147483647, %v619_v24  ;;  %v206_v55 = vld [vmem:[%s2124_s3 + $0xc8] sm:$0xff] }
  0x47   :  { %v235_v50 = vsub.f32 %v171_v26, %v203_v28  ;;  %v236_v51 = vsub.f32 %v172_v27, %v204_v34  ;;  %v265_v52 = vand.u32 2147483647, %v233_v29  ;;  %v266_v56 = vand.u32 2147483647, %v234_v36  ;;  %v563_v23 = vld [vmem:[%s2127_s6 + $0x48] sm:$0xff]  ;;  %v177_v26 = vld [vmem:[%s2123_s2 + $0xe0] sm:$0xff] }
  0x48   :  { %v532_v40 = vadd.f32 %v531_v25, %v530_v31  ;;  %v305_v21 = vadd.f32 %v304_v3, %v303_v12  ;;  %v620_v25 = vsub.f32 %v556_v4, %v588_v6  ;;  %v308_v31 = vsel %vm106_vm0, %v261_v2, 0.0  ;;  %v175_v2 = vld [vmem:[%s2123_s2 + $0xd0] sm:$0xff]  ;;  %v594_v12 = vld [vmem:[%s2128_s7 + $0x40] sm:$0xff]  ;;  %v595_v24 = vld [vmem:[%s2128_s7 + $0x48] sm:$0xff] }
  0x49   :  { %v310_v41 = vsel %vm106_vm0, %v262_v15, 0.0  ;;  %v623_v58 = vsub.f32 %v559_v38, %v591_v43  ;;  %v654_v1 = vand.u32 2147483647, %v622_v45  ;;  %v207_v3 = vld [vmem:[%s2124_s3 + $0xd0] sm:$0xff]  ;;  %v683_v5 = vsel %vm682_vm2, %v650_v47, 0.0  ;;  %v208_v15 = vld [vmem:[%s2124_s3 + $0xd8] sm:$0xff] }
  0x4a   :  { %v534_v49 = vadd.f32 %v533_v35, %v532_v40  ;;  %v1631_v35 = vld [vmem:[%s2124_s3 + $0xc0] sm:$0xff]  ;;  %v307_v37 = vadd.f32 %v306_v16, %v305_v21  ;;  %v264_v40 = vand.u32 2147483647, %v232_v14  ;;  %v684_v6 = vsel %vm682_vm2, %v651_v48, 0.0  ;;  %v176_v14 = vld [vmem:[%s2123_s2 + $0xd8] sm:$0xff]  ;;  %v596_v36 = vld [vmem:[%s2128_s7 + $0x50] sm:$0xff] }
  0x4b   :  { %v267_v9 = vand.u32 2147483647, %v235_v50  ;;  %v316_v10 = vsel %vm106_vm0, %v265_v52, 0.0  ;;  %v685_v13 = vadd.f32 %v684_v6, %v683_v5  ;;  %v625_v17 = vsub.f32 %v561_v62, %v593_v63  ;;  %v209_v27 = vld [vmem:[%s2124_s3 + $0xe0] sm:$0xff]  ;;  %v178_v38 = vld [vmem:[%s2123_s2 + $0xe8] sm:$0xff]  ;;  %v565_v47 = vld [vmem:[%s2127_s6 + $0x58] sm:$0xff] }
  0x4c   :  { %v536_v59 = vadd.f32 %v535_v44, %v534_v49  ;;  %v592_v44 = vld [vmem:[%s2128_s7 + $0x30] sm:$0xff]  ;;  %v309_v46 = vadd.f32 %v308_v31, %v307_v37  ;;  %v652_v49 = vand.u32 2147483647, %v620_v25  ;;  %v314_v61 = vsel %vm106_vm0, %v264_v40, 0.0  ;;  %v597_v48 = vld [vmem:[%s2128_s7 + $0x58] sm:$0xff] }
  0x4d   :  { %v624_v0 = vsub.f32 %v560_v42, %v592_v44  ;;  %v655_v18 = vand.u32 2147483647, %v623_v58  ;;  %v268_v21 = vand.u32 2147483647, %v236_v51  ;;  %v318_v22 = vsel %vm106_vm0, %v266_v56, 0.0  ;;  %v179_v50 = vld [vmem:[%s2123_s2 + $0xf0] sm:$0xff] }
  0x4e   :  { %v538_v7 = vadd.f32 %v537_v53, %v536_v59  ;;  %v312_v53 = vsel %vm106_vm0, %v263_v30, 0.0  ;;  %v311_v57 = vadd.f32 %v310_v41, %v309_v46  ;;  %v653_v59 = vand.u32 2147483647, %v621_v39  ;;  %v210_v39 = vld [vmem:[%s2124_s3 + $0xe8] sm:$0xff]  ;;  %v211_v51 = vld [vmem:[%s2124_s3 + $0xf0] sm:$0xff]  ;;  %v180_v62 = vld [vmem:[%s2123_s2 + $0xf8] sm:$0xff] }
  0x4f   :  { %v626_v29 = vsub.f32 %v562_v11, %v594_v12  ;;  %v656_v30 = vand.u32 2147483647, %v624_v0  ;;  %v690_v31 = vsel %vm682_vm2, %v654_v1, 0.0  ;;  %v320_v34 = vsel %vm106_vm0, %v267_v9, 0.0  ;;  %v212_v63 = vld [vmem:[%s2124_s3 + $0xf8] sm:$0xff]  ;;  %v568_v11 = vld [vmem:[%s2127_s6 + $0x70] sm:$0xff] }
  0x50   :  { %v540_v20 = vadd.f32 %v539_v60, %v538_v7  ;;  %v237_v60 = vsub.f32 %v1623_v33, %v1631_v35  ;;  %v313_v4 = vadd.f32 %v312_v53, %v311_v57  ;;  %v686_v7 = vsel %vm682_vm2, %v652_v49, 0.0  ;;  %v564_v35 = vld [vmem:[%s2127_s6 + $0x50] sm:$0xff] }
  0x51   :  { %v688_v19 = vsel %vm682_vm2, %v653_v59, 0.0  ;;  %v687_v25 = vadd.f32 %v686_v7, %v685_v13  ;;  %v627_v41 = vsub.f32 %v563_v23, %v595_v24  ;;  %v657_v42 = vand.u32 2147483647, %v625_v17  ;;  %v566_v59 = vld [vmem:[%s2127_s6 + $0x60] sm:$0xff]  ;;  %v567_v7 = vld [vmem:[%s2127_s6 + $0x68] sm:$0xff]  ;;  %v600_v12 = vld [vmem:[%s2128_s7 + $0x70] sm:$0xff] }
  0x52   :  { %v542_v32 = vadd.f32 %v541_v8, %v540_v20  ;;  %v238_v8 = vsub.f32 %v174_v54, %v206_v55  ;;  %v315_v16 = vadd.f32 %v314_v61, %v313_v4  ;;  %v239_v20 = vsub.f32 %v175_v2, %v207_v3 }
  0x53   :  { %v269_v33 = vand.u32 2147483647, %v237_v60  ;;  %v689_v37 = vadd.f32 %v688_v19, %v687_v25  ;;  %v692_v43 = vsel %vm682_vm2, %v655_v18, 0.0  ;;  %v241_v44 = vsub.f32 %v177_v26, %v209_v27  ;;  %v598_v60 = vld [vmem:[%s2128_s7 + $0x60] sm:$0xff]  ;;  %v569_v26 = vld [vmem:[%s2127_s6 + $0x78] sm:$0xff] }
  0x54   :  { %543 = vadd.xlane.f32.xlu1 %v542_v32  ;;  %v317_v28 = vadd.f32 %v316_v10, %v315_v16  ;;  %v240_v32 = vsub.f32 %v176_v14, %v208_v15  ;;  %v270_v45 = vand.u32 2147483647, %v238_v8  ;;  %v322_v46 = vsel %vm106_vm0, %v268_v21, 0.0  ;;  %v599_v8 = vld [vmem:[%s2128_s7 + $0x68] sm:$0xff]  ;;  %v601_v27 = vld [vmem:[%s2128_s7 + $0x78] sm:$0xff] }
  0x55   :  { %v691_v49 = vadd.f32 %v690_v31, %v689_v37  ;;  %v628_v53 = vsub.f32 %v564_v35, %v596_v36  ;;  %v658_v54 = vand.u32 2147483647, %v626_v29  ;;  %v694_v55 = vsel %vm682_vm2, %v656_v30, 0.0  ;;  %v570_v31 = vld [vmem:[%s2127_s6 + $0x80] sm:$0xff] }
  0x56   :  { %v319_v40 = vadd.f32 %v318_v22, %v317_v28  ;;  %v242_v56 = vsub.f32 %v178_v38, %v210_v39  ;;  %v271_v57 = vand.u32 2147483647, %v239_v20  ;;  %v324_v58 = vsel %vm106_vm0, %v269_v33, 0.0 }
  0x57   :  { %v693_v61 = vadd.f32 %v692_v43, %v691_v49  ;;  %v629_v1 = vsub.f32 %v565_v47, %v597_v48  ;;  %v659_v2 = vand.u32 2147483647, %v627_v41  ;;  %v696_v3 = vsel %vm682_vm2, %v657_v42, 0.0 }
  0x58   :  { %v321_v52 = vadd.f32 %v320_v34, %v319_v40  ;;  %v243_v4 = vsub.f32 %v179_v50, %v211_v51  ;;  %v272_v5 = vand.u32 2147483647, %v240_v32  ;;  %v326_v6 = vsel %vm106_vm0, %v270_v45, 0.0  ;;  %v602_v32 = vld [vmem:[%s2128_s7 + $0x80] sm:$0xff]  ;;  %v571_v40 = vld [vmem:[%s2127_s6 + $0x88] sm:$0xff] }
  0x59   :  { %v695_v9 = vadd.f32 %v694_v55, %v693_v61  ;;  %v630_v13 = vsub.f32 %v566_v59, %v598_v60  ;;  %v660_v14 = vand.u32 2147483647, %v628_v53  ;;  %v698_v15 = vsel %vm682_vm2, %v658_v54, 0.0 }
  0x5a   :  { %v323_v0 = vadd.f32 %v322_v46, %v321_v52  ;;  %v244_v16 = vsub.f32 %v180_v62, %v212_v63  ;;  %v273_v17 = vand.u32 2147483647, %v241_v44  ;;  %v328_v18 = vsel %vm106_vm0, %v271_v57, 0.0 }
  0x5b   :  { %v697_v19 = vadd.f32 %v696_v3, %v695_v9  ;;  %v631_v21 = vsub.f32 %v567_v7, %v599_v8  ;;  %v661_v22 = vand.u32 2147483647, %v629_v1  ;;  %v700_v23 = vsel %vm682_vm2, %v659_v2, 0.0 }
  0x5c   :  { %v325_v10 = vadd.f32 %v324_v58, %v323_v0  ;;  %v274_v24 = vand.u32 2147483647, %v242_v56  ;;  %v330_v25 = vsel %vm106_vm0, %v272_v5, 0.0  ;;  %v632_v28 = vsub.f32 %v568_v11, %v600_v12 }
  0x5d   :  { %v699_v29 = vadd.f32 %v698_v15, %v697_v19  ;;  %v662_v33 = vand.u32 2147483647, %v630_v13  ;;  %v702_v34 = vsel %vm682_vm2, %v660_v14, 0.0  ;;  %v275_v35 = vand.u32 2147483647, %v243_v4 }
  0x5e   :  { %v327_v20 = vadd.f32 %v326_v6, %v325_v10  ;;  %v276_v36 = vand.u32 2147483647, %v244_v16  ;;  %v332_v37 = vsel %vm106_vm0, %v273_v17, 0.0  ;;  %v633_v41 = vsub.f32 %v569_v26, %v601_v27 }
  0x5f   :  { %v701_v38 = vadd.f32 %v700_v23, %v699_v29  ;;  %v663_v42 = vand.u32 2147483647, %v631_v21  ;;  %v704_v43 = vsel %vm682_vm2, %v661_v22, 0.0 }
  0x60   :  { %v329_v30 = vadd.f32 %v328_v18, %v327_v20 }
  0x62   :  { %v331_v39 = vadd.f32 %v330_v25, %v329_v30 }
  0x63   :  { %17 = vsyncpa [#allocation3], 0  ;;  %v334_v44 = vsel %vm106_vm0, %v274_v24, 0.0  ;;  %v572_v45 = vld [vmem:[%s2127_s6 + $0x90] sm:$0xff]  ;;  %v603_v46 = vld [vmem:[%s2128_s7 + $0x88] sm:$0xff]  ;;  %v634_v48 = vsub.f32 %v570_v31, %v602_v32  ;;  %v703_v50 = vadd.f32 %v702_v34, %v701_v38  ;;  %v706_v52 = vsel %vm682_vm2, %v662_v33, 0.0 }
  0x64   :  { %v604_v47 = vld [vmem:[%s2128_s7 + $0x90] sm:$0xff]  ;;  %v664_v49 = vand.u32 2147483647, %v632_v28  ;;  %v333_v51 = vadd.f32 %v332_v37, %v331_v39  ;;  %v757_v53 = vld [vmem:[%s2129_s8] sm:$0xff]  ;;  %v758_v54 = vld [vmem:[%s2129_s8 + $0x8] sm:$0xff]  ;;  %v336_v56 = vsel %vm106_vm0, %v275_v35, 0.0  ;;  %v635_v1 = vsub.f32 %v571_v40, %v603_v46 }
  0x65   :  { %v759_v55 = vld [vmem:[%s2129_s8 + $0x10] sm:$0xff]  ;;  %v338_v57 = vsel %vm106_vm0, %v276_v36, 0.0  ;;  %v705_v58 = vadd.f32 %v704_v43, %v703_v50  ;;  %v789_v59 = vld [vmem:[%s2130_s9] sm:$0xff]  ;;  %v790_v60 = vld [vmem:[%s2130_s9 + $0x8] sm:$0xff]  ;;  %v665_v2 = vand.u32 2147483647, %v633_v41  ;;  %v636_v4 = vsub.f32 %v572_v45, %v604_v47 }
  0x66   :  { %v791_v61 = vld [vmem:[%s2130_s9 + $0x10] sm:$0xff]  ;;  %v335_v62 = vadd.f32 %v334_v44, %v333_v51  ;;  %v573_v63 = vld [vmem:[%s2127_s6 + $0x98] sm:$0xff]  ;;  %v708_v3 = vsel %vm682_vm2, %v663_v42, 0.0  ;;  %v666_v5 = vand.u32 2147483647, %v634_v48  ;;  %v710_v7 = vsel %vm682_vm2, %v664_v49, 0.0 }
  0x67   :  { %v605_v0 = vld [vmem:[%s2128_s7 + $0x98] sm:$0xff]  ;;  %v707_v6 = vadd.f32 %v706_v52, %v705_v58  ;;  %v574_v11 = vld [vmem:[%s2127_s6 + $0xa0] sm:$0xff]  ;;  %v575_v12 = vld [vmem:[%s2127_s6 + $0xa8] sm:$0xff]  ;;  %v821_v14 = vsub.f32 %v757_v53, %v789_v59  ;;  %v822_v15 = vsub.f32 %v758_v54, %v790_v60  ;;  %v823_v16 = vsub.f32 %v759_v55, %v791_v61  ;;  %s992_s17 = sshll.u32 %s2133_s12, 4  ;;  %s993_s17 = int_to_ptr.vmem [resolvable:$true] %s992_s17 }
  0x68   :  { %v760_v8 = vld [vmem:[%s2129_s8 + $0x18] sm:$0xff]  ;;  %v337_v10 = vadd.f32 %v336_v56, %v335_v62  ;;  %v606_v13 = vld [vmem:[%s2128_s7 + $0xa0] sm:$0xff]  ;;  %v576_v17 = vld [vmem:[%s2127_s6 + $0xb0] sm:$0xff]  ;;  %v637_v18 = vsub.f32 %v573_v63, %v605_v0  ;;  %v667_v25 = vand.u32 2147483647, %v635_v1  ;;  %v712_v26 = vsel %vm682_vm2, %v665_v2, 0.0  ;;  %p1021_p1 = scmp.lt.s32.totalorder %s993_s17, %s993_s17 }
  0x69   :  { %v792_v9 = vld [vmem:[%s2130_s9 + $0x18] sm:$0xff]  ;;  %v709_v19 = vadd.f32 %v708_v3, %v707_v6  ;;  %v761_v20 = vld [vmem:[%s2129_s8 + $0x20] sm:$0xff]  ;;  %v607_v23 = vld [vmem:[%s2128_s7 + $0xa8] sm:$0xff]  ;;  %v638_v29 = vsub.f32 %v574_v11, %v606_v13  ;;  %v668_v30 = vand.u32 2147483647, %v636_v4  ;;  %v714_v32 = vsel %vm682_vm2, %v666_v5, 0.0 }
  0x6a   :  { %v793_v21 = vld [vmem:[%s2130_s9 + $0x20] sm:$0xff]  ;;  %v339_v22 = vadd.f32 %v338_v57, %v337_v10  ;;  %v608_v24 = vld [vmem:[%s2128_s7 + $0xb0] sm:$0xff]  ;;  %v762_v27 = vld [vmem:[%s2129_s8 + $0x28] sm:$0xff]  ;;  %v824_v28 = vsub.f32 %v760_v8, %v792_v9  ;;  %v853_v37 = vand.u32 2147483647, %v821_v14  ;;  %v639_v41 = vsub.f32 %v575_v12, %v607_v23  ;;  %s1016_s20 = scalar_lea.vmem %s993_s17, 16 }
  0x6b   :  { %v711_v31 = vadd.f32 %v710_v7, %v709_v19  ;;  %v763_v33 = vld [vmem:[%s2129_s8 + $0x30] sm:$0xff]  ;;  %v794_v34 = vld [vmem:[%s2130_s9 + $0x28] sm:$0xff]  ;;  %v825_v36 = vsub.f32 %v761_v20, %v793_v21  ;;  %v854_v38 = vand.u32 2147483647, %v822_v15  ;;  %v855_v39 = vand.u32 2147483647, %v823_v16  ;;  %p1017_p0 = scmp.ne.s32.totalorder %s993_s17, %s1016_s20  ;;  %p1022_p2 = scmp.lt.s32.totalorder %s1016_s20, %s1016_s20 }
  0x6c   :  { %v795_v35 = vld [vmem:[%s2130_s9 + $0x30] sm:$0xff]  ;;  %340 = vadd.xlane.f32.xlu0 %v339_v22  ;;  %v577_v40 = vld [vmem:[%s2127_s6 + $0xb8] sm:$0xff]  ;;  %v640_v42 = vsub.f32 %v576_v17, %v608_v24  ;;  %vm885_vm3 = vcmask 15360   ;;  %v669_v45 = vand.u32 2147483647, %v637_v18  ;;  %v716_v46 = vsel %vm682_vm2, %v667_v25, 0.0 }
  0x6d   :  { %v713_v43 = vadd.f32 %v712_v26, %v711_v31  ;;  %v609_v44 = vld [vmem:[%s2128_s7 + $0xb8] sm:$0xff]  ;;  %v826_v47 = vsub.f32 %v762_v27, %v794_v34  ;;  %v856_v48 = vand.u32 2147483647, %v824_v28  ;;  %v578_v49 = vld [vmem:[%s2127_s6 + $0xc0] sm:$0xff]  ;;  %v670_v50 = vand.u32 2147483647, %v638_v29  ;;  %p1023_p3 = por %p1022_p2, %p1021_p1 }
  0x6e   :  { %v718_v52 = vsel %vm682_vm2, %v668_v30, 0.0  ;;  %v764_v53 = vld [vmem:[%s2129_s8 + $0x38] sm:$0xff]  ;;  %v827_v55 = vsub.f32 %v763_v33, %v795_v35  ;;  %v610_v56 = vld [vmem:[%s2128_s7 + $0xc0] sm:$0xff]  ;;  %v857_v57 = vand.u32 2147483647, %v825_v36  ;;  %v886_v58 = vsel %vm885_vm3, %v853_v37, 0.0 }
  0x6f   :  { %v715_v51 = vadd.f32 %v714_v32, %v713_v43  ;;  %v796_v54 = vld [vmem:[%s2130_s9 + $0x38] sm:$0xff]  ;;  %v887_v59 = vsel %vm885_vm3, %v854_v38, 0.0  ;;  %v889_v60 = vsel %vm885_vm3, %v855_v39, 0.0  ;;  %v641_v61 = vsub.f32 %v577_v40, %v609_v44  ;;  %v765_v0 = vld [vmem:[%s2129_s8 + $0x40] sm:$0xff]  ;;  %v579_v3 = vld [vmem:[%s2127_s6 + $0xc8] sm:$0xff]  ;;  %p1024_p4 = pnand %p1023_p3, %p1017_p0 }
  0x70   :  { %v671_v62 = vand.u32 2147483647, %v639_v41  ;;  %v797_v1 = vld [vmem:[%s2130_s9 + $0x40] sm:$0xff]  ;;  %v888_v2 = vadd.f32 %v887_v59, %v886_v58  ;;  %v611_v4 = vld [vmem:[%s2128_s7 + $0xc8] sm:$0xff]  ;;  %v720_v5 = vsel %vm682_vm2, %v669_v45, 0.0  ;;  %v828_v6 = vsub.f32 %v764_v53, %v796_v54  ;;  %v580_v15 = vld [vmem:[%s2127_s6 + $0xd0] sm:$0xff] }
  0x71   :  { %v717_v63 = vadd.f32 %v716_v46, %v715_v51  ;;  %v858_v7 = vand.u32 2147483647, %v826_v47  ;;  %v891_v8 = vsel %vm885_vm3, %v856_v48, 0.0  ;;  %v642_v9 = vsub.f32 %v578_v49, %v610_v56  ;;  %v766_v12 = vld [vmem:[%s2129_s8 + $0x48] sm:$0xff]  ;;  %v612_v16 = vld [vmem:[%s2128_s7 + $0xd0] sm:$0xff]  ;;  %v581_v27 = vld [vmem:[%s2127_s6 + $0xd8] sm:$0xff] }
  0x72   :  { %v672_v10 = vand.u32 2147483647, %v640_v42  ;;  %v798_v13 = vld [vmem:[%s2130_s9 + $0x48] sm:$0xff]  ;;  %v890_v14 = vadd.f32 %v889_v60, %v888_v2  ;;  %v722_v17 = vsel %vm682_vm2, %v670_v50, 0.0  ;;  %v829_v18 = vsub.f32 %v765_v0, %v797_v1  ;;  %v767_v24 = vld [vmem:[%s2129_s8 + $0x50] sm:$0xff]  ;;  %v613_v28 = vld [vmem:[%s2128_s7 + $0xd8] sm:$0xff] }
  0x73   :  { %v719_v11 = vadd.f32 %v718_v52, %v717_v63  ;;  %v859_v19 = vand.u32 2147483647, %v827_v55  ;;  %v893_v20 = vsel %vm885_vm3, %v857_v57, 0.0  ;;  %v643_v21 = vsub.f32 %v579_v3, %v611_v4  ;;  %v799_v25 = vld [vmem:[%s2130_s9 + $0x50] sm:$0xff]  ;;  %v768_v36 = vld [vmem:[%s2129_s8 + $0x58] sm:$0xff]  ;;  %v582_v39 = vld [vmem:[%s2127_s6 + $0xe0] sm:$0xff] }
  0x74   :  { %v673_v22 = vand.u32 2147483647, %v641_v61  ;;  %v892_v26 = vadd.f32 %v891_v8, %v890_v14  ;;  %v724_v29 = vsel %vm682_vm2, %v671_v62, 0.0  ;;  %v830_v30 = vsub.f32 %v766_v12, %v798_v13  ;;  %v800_v37 = vld [vmem:[%s2130_s9 + $0x58] sm:$0xff]  ;;  %v614_v40 = vld [vmem:[%s2128_s7 + $0xe0] sm:$0xff]  ;;  %v583_v51 = vld [vmem:[%s2127_s6 + $0xe8] sm:$0xff] }
  0x75   :  { %v721_v23 = vadd.f32 %v720_v5, %v719_v11  ;;  %v860_v31 = vand.u32 2147483647, %v828_v6  ;;  %v895_v32 = vsel %vm885_vm3, %v858_v7, 0.0  ;;  %v644_v33 = vsub.f32 %v580_v15, %v612_v16  ;;  %v769_v48 = vld [vmem:[%s2129_s8 + $0x60] sm:$0xff]  ;;  %v615_v52 = vld [vmem:[%s2128_s7 + $0xe8] sm:$0xff]  ;;  %v584_v63 = vld [vmem:[%s2127_s6 + $0xf0] sm:$0xff] }
  0x76   :  { %v674_v34 = vand.u32 2147483647, %v642_v9  ;;  %v894_v38 = vadd.f32 %v893_v20, %v892_v26  ;;  %v726_v41 = vsel %vm682_vm2, %v672_v10, 0.0  ;;  %v831_v42 = vsub.f32 %v767_v24, %v799_v25  ;;  %v801_v49 = vld [vmem:[%s2130_s9 + $0x60] sm:$0xff]  ;;  %v770_v60 = vld [vmem:[%s2129_s8 + $0x68] sm:$0xff]  ;;  %v616_v0 = vld [vmem:[%s2128_s7 + $0xf0] sm:$0xff] }
  0x77   :  { %v723_v35 = vadd.f32 %v722_v17, %v721_v23  ;;  %v861_v43 = vand.u32 2147483647, %v829_v18  ;;  %v897_v44 = vsel %vm885_vm3, %v859_v19, 0.0  ;;  %v645_v45 = vsub.f32 %v581_v27, %v613_v28  ;;  %v802_v61 = vld [vmem:[%s2130_s9 + $0x68] sm:$0xff]  ;;  %v771_v8 = vld [vmem:[%s2129_s8 + $0x70] sm:$0xff]  ;;  %v585_v11 = vld [vmem:[%s2127_s6 + $0xf8] sm:$0xff] }
  0x78   :  { %v675_v46 = vand.u32 2147483647, %v643_v21  ;;  %v896_v50 = vadd.f32 %v895_v32, %v894_v38  ;;  %v728_v53 = vsel %vm682_vm2, %v673_v22, 0.0  ;;  %v832_v54 = vsub.f32 %v768_v36, %v800_v37  ;;  %v803_v9 = vld [vmem:[%s2130_s9 + $0x70] sm:$0xff]  ;;  %v617_v12 = vld [vmem:[%s2128_s7 + $0xf8] sm:$0xff] }
  0x79   :  { %v725_v47 = vadd.f32 %v724_v29, %v723_v35  ;;  %v862_v55 = vand.u32 2147483647, %v830_v30  ;;  %v899_v56 = vsel %vm885_vm3, %v860_v31, 0.0  ;;  %v646_v57 = vsub.f32 %v582_v39, %v614_v40  ;;  %v772_v20 = vld [vmem:[%s2129_s8 + $0x78] sm:$0xff]  ;;  %v773_v30 = vld [vmem:[%s2129_s8 + $0x80] sm:$0xff]  ;;  %v774_v39 = vld [vmem:[%s2129_s8 + $0x88] sm:$0xff] }
  0x7a   :  { %v676_v58 = vand.u32 2147483647, %v644_v33  ;;  %v898_v62 = vadd.f32 %v897_v44, %v896_v50  ;;  %v730_v1 = vsel %vm682_vm2, %v674_v34, 0.0  ;;  %v833_v2 = vsub.f32 %v769_v48, %v801_v49  ;;  %v804_v21 = vld [vmem:[%s2130_s9 + $0x78] sm:$0xff]  ;;  %v805_v31 = vld [vmem:[%s2130_s9 + $0x80] sm:$0xff]  ;;  %v806_v40 = vld [vmem:[%s2130_s9 + $0x88] sm:$0xff] }
  0x7b   :  { %v727_v59 = vadd.f32 %v726_v41, %v725_v47  ;;  %v863_v3 = vand.u32 2147483647, %v831_v42  ;;  %v901_v4 = vsel %vm885_vm3, %v861_v43, 0.0  ;;  %v647_v5 = vsub.f32 %v583_v51, %v615_v52  ;;  %v775_v48 = vld [vmem:[%s2129_s8 + $0x90] sm:$0xff] }
  0x7c   :  { %v677_v6 = vand.u32 2147483647, %v645_v45  ;;  %v900_v10 = vadd.f32 %v899_v56, %v898_v62  ;;  %v732_v13 = vsel %vm682_vm2, %v675_v46, 0.0  ;;  %v834_v14 = vsub.f32 %v770_v60, %v802_v61  ;;  %v807_v49 = vld [vmem:[%s2130_s9 + $0x90] sm:$0xff]  ;;  %v776_v56 = vld [vmem:[%s2129_s8 + $0x98] sm:$0xff] }
  0x7d   :  { %v729_v7 = vadd.f32 %v728_v53, %v727_v59  ;;  %v864_v15 = vand.u32 2147483647, %v832_v54  ;;  %v903_v16 = vsel %vm885_vm3, %v862_v55, 0.0  ;;  %v648_v17 = vsub.f32 %v584_v63, %v616_v0  ;;  %v777_v0 = vld [vmem:[%s2129_s8 + $0xa0] sm:$0xff] }
  0x7e   :  { %v678_v18 = vand.u32 2147483647, %v646_v57  ;;  %v902_v22 = vadd.f32 %v901_v4, %v900_v10  ;;  %v734_v23 = vsel %vm682_vm2, %v676_v58, 0.0  ;;  %v835_v24 = vsub.f32 %v771_v8, %v803_v9  ;;  %v808_v57 = vld [vmem:[%s2130_s9 + $0x98] sm:$0xff]  ;;  %v778_v8 = vld [vmem:[%s2129_s8 + $0xa8] sm:$0xff] }
  0x7f   :  { %v731_v19 = vadd.f32 %v730_v1, %v729_v7  ;;  %v865_v25 = vand.u32 2147483647, %v833_v2  ;;  %v905_v26 = vsel %vm885_vm3, %v863_v3, 0.0  ;;  %v649_v27 = vsub.f32 %v585_v11, %v617_v12  ;;  %v809_v1 = vld [vmem:[%s2130_s9 + $0xa0] sm:$0xff]  ;;  %v810_v9 = vld [vmem:[%s2130_s9 + $0xa8] sm:$0xff] }
  0x80   :  { %v679_v28 = vand.u32 2147483647, %v647_v5  ;;  %v904_v32 = vadd.f32 %v903_v16, %v902_v22  ;;  %v736_v33 = vsel %vm682_vm2, %v677_v6, 0.0  ;;  %v836_v34 = vsub.f32 %v772_v20, %v804_v21  ;;  %v811_v16 = vld [vmem:[%s2130_s9 + $0xb0] sm:$0xff]  ;;  %v780_v22 = vld [vmem:[%s2129_s8 + $0xb8] sm:$0xff] }
  0x81   :  { %v733_v29 = vadd.f32 %v732_v13, %v731_v19  ;;  %v866_v35 = vand.u32 2147483647, %v834_v14  ;;  %v907_v36 = vsel %vm885_vm3, %v864_v15, 0.0  ;;  %v680_v37 = vand.u32 2147483647, %v648_v17  ;;  %v779_v15 = vld [vmem:[%s2129_s8 + $0xb0] sm:$0xff] }
  0x82   :  { %v906_v41 = vadd.f32 %v905_v26, %v904_v32  ;;  %v738_v42 = vsel %vm682_vm2, %v678_v18, 0.0  ;;  %v837_v43 = vsub.f32 %v773_v30, %v805_v31  ;;  %v867_v44 = vand.u32 2147483647, %v835_v24  ;;  %v960_v18 = vld [vmem:[%s2131_s10] sm:$0xff] }
  0x83   :  { %v735_v38 = vadd.f32 %v734_v23, %v733_v29  ;;  %v909_v45 = vsel %vm885_vm3, %v865_v25, 0.0  ;;  %v681_v46 = vand.u32 2147483647, %v649_v27  ;;  %v740_v51 = vsel %vm682_vm2, %v679_v28, 0.0  ;;  %v812_v23 = vld [vmem:[%s2130_s9 + $0xb8] sm:$0xff]  ;;  %v781_v29 = vld [vmem:[%s2129_s8 + $0xc0] sm:$0xff] }
  0x84   :  { %v908_v50 = vadd.f32 %v907_v36, %v906_v41  ;;  %v838_v52 = vsub.f32 %v774_v39, %v806_v40  ;;  %v868_v53 = vand.u32 2147483647, %v836_v34  ;;  %v911_v54 = vsel %vm885_vm3, %v866_v35, 0.0  ;;  %v813_v30 = vld [vmem:[%s2130_s9 + $0xc0] sm:$0xff]  ;;  %v782_v35 = vld [vmem:[%s2129_s8 + $0xc8] sm:$0xff]  ;;  %v783_v41 = vld [vmem:[%s2129_s8 + $0xd0] sm:$0xff] }
  0x85   :  { %v737_v47 = vadd.f32 %v736_v33, %v735_v38  ;;  %v742_v59 = vsel %vm682_vm2, %v680_v37, 0.0  ;;  %v839_v60 = vsub.f32 %v775_v48, %v807_v49  ;;  %v869_v61 = vand.u32 2147483647, %v837_v43  ;;  %v814_v36 = vld [vmem:[%s2130_s9 + $0xc8] sm:$0xff]  ;;  %v784_v49 = vld [vmem:[%s2129_s8 + $0xd8] sm:$0xff] }
  0x86   :  { %v910_v58 = vadd.f32 %v909_v45, %v908_v50  ;;  %v913_v62 = vsel %vm885_vm3, %v867_v44, 0.0  ;;  %v744_v3 = vsel %vm682_vm2, %v681_v46, 0.0  ;;  %v840_v4 = vsub.f32 %v776_v56, %v808_v57  ;;  %v816_v50 = vld [vmem:[%s2130_s9 + $0xd8] sm:$0xff]  ;;  %v785_v56 = vld [vmem:[%s2129_s8 + $0xe0] sm:$0xff] }
  0x87   :  { %v739_v55 = vadd.f32 %v738_v42, %v737_v47  ;;  %v870_v5 = vand.u32 2147483647, %v838_v52  ;;  %v915_v6 = vsel %vm885_vm3, %v868_v53, 0.0  ;;  %v841_v11 = vsub.f32 %v777_v0, %v809_v1  ;;  %v815_v42 = vld [vmem:[%s2130_s9 + $0xd0] sm:$0xff]  ;;  %v817_v57 = vld [vmem:[%s2130_s9 + $0xe0] sm:$0xff]  ;;  %v818_v0 = vld [vmem:[%s2130_s9 + $0xe8] sm:$0xff] }
  0x88   :  { %v912_v2 = vadd.f32 %v911_v54, %v910_v58  ;;  %v871_v12 = vand.u32 2147483647, %v839_v60  ;;  %v917_v13 = vsel %vm885_vm3, %v869_v61, 0.0  ;;  %v842_v19 = vsub.f32 %v778_v8, %v810_v9 }
  0x89   :  { %v741_v63 = vadd.f32 %v740_v51, %v739_v55  ;;  %v872_v20 = vand.u32 2147483647, %v840_v4  ;;  %v919_v21 = vsel %vm885_vm3, %v870_v5, 0.0  ;;  %v843_v25 = vsub.f32 %v779_v15, %v811_v16 }
  0x8a   :  { %v914_v10 = vadd.f32 %v913_v62, %v912_v2  ;;  %v873_v26 = vand.u32 2147483647, %v841_v11  ;;  %v921_v27 = vsel %vm885_vm3, %v871_v12, 0.0  ;;  %v961_v28 = vsel %vm682_vm2, %v960_v18, 0.0 }
  0x8b   :  { %v743_v7 = vadd.f32 %v742_v59, %v741_v63  ;;  %v844_v32 = vsub.f32 %v780_v22, %v812_v23  ;;  %v874_v33 = vand.u32 2147483647, %v842_v19  ;;  %v923_v34 = vsel %vm885_vm3, %v872_v20, 0.0  ;;  %v786_v63 = vld [vmem:[%s2129_s8 + $0xe8] sm:$0xff] }
  0x8c   :  { %v916_v17 = vadd.f32 %v915_v6, %v914_v10  ;;  %v845_v38 = vsub.f32 %v781_v29, %v813_v30  ;;  %v875_v39 = vand.u32 2147483647, %v843_v25  ;;  %v925_v40 = vsel %vm885_vm3, %v873_v26, 0.0  ;;  %v787_v6 = vld [vmem:[%s2129_s8 + $0xf0] sm:$0xff] }
  0x8d   :  { %v745_v14 = vadd.f32 %v744_v3, %v743_v7  ;;  %v846_v45 = vsub.f32 %v782_v35, %v814_v36  ;;  %v876_v46 = vand.u32 2147483647, %v844_v32  ;;  %v927_v47 = vsel %vm885_vm3, %v874_v33, 0.0  ;;  %v819_v7 = vld [vmem:[%s2130_s9 + $0xf0] sm:$0xff]  ;;  %v973_v36 = vld [vmem:[%s2132_s11] sm:$0xff] }
  0x8e   :  { %v918_v24 = vadd.f32 %v917_v13, %v916_v17  ;;  %v847_v52 = vsub.f32 %v783_v41, %v815_v42  ;;  %v877_v53 = vand.u32 2147483647, %v845_v38  ;;  %v929_v54 = vsel %vm885_vm3, %v875_v39, 0.0  ;;  %v788_v13 = vld [vmem:[%s2129_s8 + $0xf8] sm:$0xff] }
  0x8f   :  { %746 = vadd.xlane.f32.xlu1 %v745_v14  ;;  %v848_v59 = vsub.f32 %v784_v49, %v816_v50  ;;  %v878_v60 = vand.u32 2147483647, %v846_v45  ;;  %v931_v61 = vsel %vm885_vm3, %v876_v46, 0.0  ;;  %v849_v2 = vsub.f32 %v785_v56, %v817_v57  ;;  %v820_v14 = vld [vmem:[%s2130_s9 + $0xf8] sm:$0xff] }
  0x90   :  { %v920_v31 = vadd.f32 %v919_v21, %v918_v24  ;;  %v879_v3 = vand.u32 2147483647, %v847_v52  ;;  %v933_v4 = vsel %vm885_vm3, %v877_v53, 0.0  ;;  %v850_v9 = vsub.f32 %v786_v63, %v818_v0 }
  0x91   :  { %v880_v10 = vand.u32 2147483647, %v848_v59  ;;  %v935_v11 = vsel %vm885_vm3, %v878_v60, 0.0  ;;  %v851_v16 = vsub.f32 %v787_v6, %v819_v7  ;;  %v881_v17 = vand.u32 2147483647, %v849_v2 }
  0x92   :  { %v922_v37 = vadd.f32 %v921_v27, %v920_v31  ;;  %v937_v18 = vsel %vm885_vm3, %v879_v3, 0.0  ;;  %v852_v21 = vsub.f32 %v788_v13, %v820_v14  ;;  %v882_v22 = vand.u32 2147483647, %v850_v9 }
  0x93   :  { %962 = vadd.xlane.f32.xlu1 %v961_v28  ;;  %v939_v23 = vsel %vm885_vm3, %v880_v10, 0.0  ;;  %v883_v25 = vand.u32 2147483647, %v851_v16  ;;  %v941_v26 = vsel %vm885_vm3, %v881_v17, 0.0 }
  0x94   :  { %v924_v43 = vadd.f32 %v923_v34, %v922_v37  ;;  %v884_v28 = vand.u32 2147483647, %v852_v21  ;;  %v943_v29 = vsel %vm885_vm3, %v882_v22, 0.0  ;;  %v974_v37 = vsel %vm682_vm2, %v973_v36, 0.0 }
  0x95   :  { %v945_v31 = vsel %vm885_vm3, %v883_v25, 0.0 }
  0x96   :  { %v926_v51 = vadd.f32 %v925_v40, %v924_v43  ;;  %v947_v33 = vsel %vm885_vm3, %v884_v28, 0.0 }
  0x98   :  { %v928_v58 = vadd.f32 %v927_v47, %v926_v51 }
  0x9a   :  { %v930_v1 = vadd.f32 %v929_v54, %v928_v58 }
  0x9c   :  { %v932_v8 = vadd.f32 %v931_v61, %v930_v1 }
  0x9e   :  { %v934_v15 = vadd.f32 %v933_v4, %v932_v8 }
  0xa0   :  { %v936_v20 = vadd.f32 %v935_v11, %v934_v15 }
  0xa2   :  { %v938_v24 = vadd.f32 %v937_v18, %v936_v20 }
  0xa4   :  { %v940_v27 = vadd.f32 %v939_v23, %v938_v24 }
  0xa6   :  { %v942_v30 = vadd.f32 %v941_v26, %v940_v27 }
  0xa8   :  { %v944_v32 = vadd.f32 %v943_v29, %v942_v30 }
  0xaa   :  { %v946_v34 = vadd.f32 %v945_v31, %v944_v32 }
  0xac   :  { %v948_v35 = vadd.f32 %v947_v33, %v946_v34 }
  0xae   :  { %949 = vadd.xlane.f32.xlu0 %v948_v35 }
  0xaf   :  { %v139_v44 = vpop.xlane.xlu0 %138 }
  0xb0   :  { %v140_v48 = vrot.slane %v139_v44, 4 }
  0xb2   :  { %v141_v55 = vadd.f32 %v140_v48, %v139_v44  ;;  %975 = vadd.xlane.f32.xlu0 %v974_v37 }
  0xb4   :  { %v142_v62 = vrot.slane %v141_v55, 2 }
  0xb6   :  { %v143_v5 = vadd.f32 %v142_v62, %v141_v55 }
  0xb8   :  { %v144_v12 = vrot.slane %v143_v5, 1 }
  0xba   :  { %v145_v19 = vadd.f32 %v144_v12, %v143_v5 }
  0xbc   :  { %1001 = vpush %v145_v19 }
  0xdd   :  { %v544_v38 = vpop.xlane.xlu1 %543 }
  0xde   :  { %v545_v39 = vrot.slane %v544_v38, 4 }
  0xe0   :  { %v546_v40 = vadd.f32 %v545_v39, %v544_v38 }
  0xe2   :  { %v547_v41 = vrot.slane %v546_v40, 2 }
  0xe4   :  { %v548_v44 = vadd.f32 %v547_v41, %v546_v40 }
  0xe6   :  { %v549_v47 = vrot.slane %v548_v44, 1 }
  0xe8   :  { %v550_v50 = vadd.f32 %v549_v47, %v548_v44 }
  0xed   :  { %s1002_s13 = spop %1001 }
  0xee   :  { %148 = sst [smem:[#allocation2]] %s1002_s13 }
  0xf5   :  { %v341_v42 = vpop.xlane.xlu0 %340 }
  0xf6   :  { %v342_v43 = vrot.slane %v341_v42, 4 }
  0xf8   :  { %v343_v45 = vadd.f32 %v342_v43, %v341_v42 }
  0xfa   :  { %v344_v46 = vrot.slane %v343_v45, 2 }
  0xfc   :  { %v345_v48 = vadd.f32 %v344_v46, %v343_v45 }
  0xfe   :  { %v346_v49 = vrot.slane %v345_v48, 1 }
 0x100   :  { %v347_v51 = vadd.f32 %v346_v49, %v345_v48 }
 0x102   :  { %1003 = vpush %v347_v51 }
 0x103   :  { %1005 = vpush %v550_v50 }
 0x118   :  { %v747_v52 = vpop.xlane.xlu1 %746 }
 0x119   :  { %v748_v53 = vrot.slane %v747_v52, 4 }
 0x11b   :  { %v749_v54 = vadd.f32 %v748_v53, %v747_v52 }
 0x11c   :  { %v963_v59 = vpop.xlane.xlu1 %962 }
 0x11d   :  { %v750_v55 = vrot.slane %v749_v54, 2  ;;  %v964_v60 = vrot.slane %v963_v59, 4 }
 0x11f   :  { %v751_v56 = vadd.f32 %v750_v55, %v749_v54  ;;  %v965_v61 = vadd.f32 %v964_v60, %v963_v59 }
 0x121   :  { %v752_v57 = vrot.slane %v751_v56, 1  ;;  %v966_v62 = vrot.slane %v965_v61, 2 }
 0x123   :  { %v753_v58 = vadd.f32 %v752_v57, %v751_v56  ;;  %v967_v1 = vadd.f32 %v966_v62, %v965_v61 }
 0x125   :  { %1007 = vpush %v753_v58  ;;  %v968_v6 = vrot.slane %v967_v1, 1 }
 0x127   :  { %v969_v11 = vadd.f32 %v968_v6, %v967_v1 }
 0x133   :  { %s1004_s11 = spop %1003 }
 0x134   :  { %350 = sst [smem:[#allocation2 + $0x1]] %s1004_s11  ;;  %s1006_s0 = spop %1005 }
 0x135   :  { %553 = sst [smem:[#allocation2 + $0x2]] %s1006_s0 }
 0x137   :  { %v950_v63 = vpop.xlane.xlu0 %949 }
 0x138   :  { %v951_v0 = vrot.slane %v950_v63, 4 }
 0x13a   :  { %v952_v2 = vadd.f32 %v951_v0, %v950_v63 }
 0x13b   :  { %v976_v3 = vpop.xlane.xlu0 %975 }
 0x13c   :  { %v953_v4 = vrot.slane %v952_v2, 2  ;;  %v977_v5 = vrot.slane %v976_v3, 4 }
 0x13e   :  { %v978_v7 = vadd.f32 %v977_v5, %v976_v3  ;;  %v954_v8 = vadd.f32 %v953_v4, %v952_v2 }
 0x140   :  { %v979_v9 = vrot.slane %v978_v7, 2  ;;  %v955_v10 = vrot.slane %v954_v8, 1 }
 0x142   :  { %v980_v12 = vadd.f32 %v979_v9, %v978_v7  ;;  %v956_v13 = vadd.f32 %v955_v10, %v954_v8 }
 0x144   :  { %1009 = vpush %v956_v13  ;;  %v981_v14 = vrot.slane %v980_v12, 1 }
 0x145   :  { %1011 = vpush %v969_v11 }
 0x146   :  { %v982_v15 = vadd.f32 %v981_v14, %v980_v12 }
 0x148   :  { %1013 = vpush %v982_v15 }
 0x156   :  { %s1008_s14 = spop %1007 }
 0x157   :  { %756 = sst [smem:[#allocation2 + $0x3]] %s1008_s14 }
 0x175   :  { %s1010_s1 = spop %1009 }
 0x176   :  { %959 = sst [smem:[#allocation2 + $0x4]] %s1010_s1  ;;  %s1012_s18 = spop %1011 }
 0x177   :  { %972 = sst [smem:[#allocation2 + $0x5]] %s1012_s18 }
 0x179   :  { %s1014_s19 = spop %1013 }
 0x17a   :  { %985 = sst [smem:[#allocation2 + $0x6]] %s1014_s19 }
 0x17b   :  { %1027 = shalt.err (!%p1024_p4)
}
 0x17c   :  { %s1030_s21 = smov [#allocation2]  }
 0x17d   :  { %995 = dma.smem_to_vmem %s1030_s21, 16, %s993_s17, [#allocation3]  }
 0x17e   :  { %1028 = dma.done.wait [#allocation3], 16  }
 0x17f   :  { %1029 = vsyncadd [#allocation3], 4294967280 }
 0x180   :  { %999 = sfence }
 0x181   :  { %1000 = vsyncpa [#allocation3], 1 }

</bundles_post_ra>
